<compile_context>
chip_gen: v5e
topology: v5e:2x2
jax: 0.10.0
libtpu: 0.0.40
codegen_flags: <defaults>
</compile_context>

<pallas_src>
import math

import jax
import jax.numpy as jnp
from jax.experimental import pallas as pl
from jax.experimental.pallas import tpu as pltpu

_LANE = 128


def _round_up(n, m):
    return ((n + m - 1) // m) * m


def _mlp_forward_kernel(off_ref, x_ref, w1_ref, b1_ref, w2_ref, b2_ref,
                        w3_ref, b3_ref, o_ref):
    # Cast the f32 activation tile to bf16 in-kernel (saves a wrapper pass).
    x = x_ref[...].astype(jnp.bfloat16)
    # Layer 1: (TB, 784) bf16 @ (784, H1p) bf16 -> f32 accum, + bias, ReLU
    h1 = jnp.dot(x, w1_ref[...], preferred_element_type=jnp.float32)
    h1 = jnp.maximum(h1 + b1_ref[...], 0.0)
    # Layer 2: (TB, H1p) @ (H1p, H2p)
    h2 = jnp.dot(h1.astype(jnp.bfloat16), w2_ref[...],
                 preferred_element_type=jnp.float32)
    h2 = jnp.maximum(h2 + b2_ref[...], 0.0)
    # Layer 3 (logits): (TB, H2p) @ (H2p, Op)
    out = jnp.dot(h2.astype(jnp.bfloat16), w3_ref[...],
                  preferred_element_type=jnp.float32) + b3_ref[...]
    # Task masking with runtime offsets (SMEM scalars). Padded columns
    # (>= n_outputs) are also filled and later sliced away in the wrapper.
    col = jax.lax.broadcasted_iota(jnp.int32, out.shape, 1)
    masked = (col < off_ref[0]) | (col >= off_ref[1])
    out = jnp.where(masked, -1.0e11, out)   # Python literal: no captured consts
    o_ref[...] = out.astype(o_ref.dtype)


def prepare_params(params):
    """Pad output/contraction dims to lane multiples and cast weights to bf16.

    Call ONCE (outside the hot path) and reuse the result for every forward.
    Weights are (in, out). Zero padding keeps the contractions exact.
    """
    w1, b1, w2, b2, w3, b3 = params
    D_in, H1 = w1.shape
    H2 = w2.shape[1]
    D_out = w3.shape[1]
    H1p = _round_up(H1, _LANE)
    H2p = _round_up(H2, _LANE)
    Op = _round_up(D_out, _LANE)

    def pad2(a, rows, cols):
        return jnp.pad(a, ((0, rows - a.shape[0]), (0, cols - a.shape[1])))

    return dict(
        D_in=D_in, H1p=H1p, H2p=H2p, Op=Op, D_out=D_out,
        w1=pad2(w1, D_in, H1p).astype(jnp.bfloat16),   # keep 784 rows (full dim)
        b1=pad2(b1, 1, H1p).astype(jnp.float32),
        w2=pad2(w2, H1p, H2p).astype(jnp.bfloat16),
        b2=pad2(b2, 1, H2p).astype(jnp.float32),
        w3=pad2(w3, H2p, Op).astype(jnp.bfloat16),
        b3=pad2(b3, 1, Op).astype(jnp.float32),
    )


def net_forward(x, prepared, *, is_cifar=False, task=0, nc_per_task=None,
                n_outputs=10, block_b=256):
    """Pallas forward pass of Net (MLP branch). x: (B, 784) float32.

    `prepared` is the output of `prepare_params` (padded bf16 weights, cached).
    """
    B, D_in = x.shape
    assert D_in == prepared["D_in"]
    H1p, H2p, Op = prepared["H1p"], prepared["H2p"], prepared["Op"]

    # compute_offsets(task) equivalent, passed at runtime (no recompile / task).
    if is_cifar:
        offset1 = int(task * nc_per_task)
        offset2 = int((task + 1) * nc_per_task)
    else:
        offset1, offset2 = 0, n_outputs
    offsets = jnp.asarray([offset1, offset2], dtype=jnp.int32)

    # Batch tiling: 256 fills the 256-wide MXU on v6e/v7x and amortizes the
    # per-grid-step overhead; small batches round to 16 (bf16 sublane packing).
    TB = block_b if B >= block_b else _round_up(B, 16)
    Bp = _round_up(B, TB)
    if Bp != B:
        x = jnp.pad(x, ((0, Bp - B), (0, 0)))   # batch pad only; features stay 784

    grid = (Bp // TB,)

    # Weights/biases: constant block index -> fetched once, VMEM-resident.
    const = lambda shape: pl.BlockSpec(shape, lambda i, off: (0, 0))

    flops = 2 * Bp * (D_in * H1p + H1p * H2p + H2p * Op)
    bytes_accessed = (Bp * D_in * 4                       # x (f32 in)
                      + (D_in * H1p + H1p * H2p + H2p * Op) * 2   # bf16 weights
                      + (H1p + H2p + Op) * 4              # f32 biases
                      + Bp * Op * 4)                      # f32 out

    out_padded = pl.pallas_call(
        _mlp_forward_kernel,
        out_shape=jax.ShapeDtypeStruct((Bp, Op), jnp.float32),
        grid_spec=pltpu.PrefetchScalarGridSpec(
            num_scalar_prefetch=1,
            grid=grid,
            in_specs=[
                pl.BlockSpec((TB, D_in), lambda i, off: (i, 0)),  # x batch tile
                const((D_in, H1p)),    # W1 (in, out)
                const((1, H1p)),       # b1
                const((H1p, H2p)),     # W2
                const((1, H2p)),       # b2
                const((H2p, Op)),      # W3
                const((1, Op)),        # b3
            ],
            out_specs=pl.BlockSpec((TB, Op), lambda i, off: (i, 0)),
        ),
        compiler_params=pltpu.CompilerParams(
            dimension_semantics=("parallel",)),
        cost_estimate=pl.CostEstimate(flops=flops, transcendentals=0,
                                      bytes_accessed=bytes_accessed),
    )(offsets, x, prepared["w1"], prepared["b1"], prepared["w2"],
      prepared["b2"], prepared["w3"], prepared["b3"])

    return out_padded[:B, :n_outputs]


def init_mlp_params(key, sizes=(784, 400, 400, 10)):
    """Deterministic PyTorch-nn.Linear-style init: U(-1/sqrt(fan_in), ...).
    Weights returned already transposed to (in, out)."""
    params = []
    for i in range(len(sizes) - 1):
        fan_in, fan_out = sizes[i], sizes[i + 1]
        key, kw, kb = jax.random.split(key, 3)
        bound = 1.0 / math.sqrt(fan_in)
        w = jax.random.uniform(kw, (fan_in, fan_out), jnp.float32,
                               minval=-bound, maxval=bound)
        b = jax.random.uniform(kb, (1, fan_out), jnp.float32,
                               minval=-bound, maxval=bound)
        params += [w, b]
    return tuple(params)


def _reference_forward(x, params, *, offset1, offset2):
    """Pure-JAX reference using the same bf16-weight / f32-accum recipe."""
    w1, b1, w2, b2, w3, b3 = params
    bf = jnp.bfloat16
    h1 = jnp.maximum(jnp.dot(x.astype(bf), w1.astype(bf),
                             preferred_element_type=jnp.float32) + b1, 0.0)
    h2 = jnp.maximum(jnp.dot(h1.astype(bf), w2.astype(bf),
                             preferred_element_type=jnp.float32) + b2, 0.0)
    out = jnp.dot(h2.astype(bf), w3.astype(bf),
                  preferred_element_type=jnp.float32) + b3
    col = jnp.arange(out.shape[1])[None, :]
    return jnp.where((col < offset1) | (col >= offset2), -1.0e11, out)


if __name__ == "__main__":
    key = jax.random.PRNGKey(0)
    kx, kp = jax.random.split(key)

    B, D_in, n_outputs = 8, 784, 10
    x = jax.random.normal(kx, (B, D_in), jnp.float32)
    params = init_mlp_params(kp, sizes=(D_in, 400, 400, n_outputs))

    # Pad/cast the weights ONCE (hoisted out of the per-call hot path).
    prepared = jax.tree_util.tree_map(
        lambda a: jax.block_until_ready(a) if isinstance(a, jnp.ndarray) else a,
        prepare_params(params))

    # Non-CIFAR branch of Net.forward: no class masking.
    out = jax.block_until_ready(
        net_forward(x, prepared, is_cifar=False, task=0, n_outputs=n_outputs))
    ref = _reference_forward(x, params, offset1=0, offset2=n_outputs)
    assert out.shape == (B, n_outputs)
    assert jnp.allclose(out, ref, atol=1e-2, rtol=1e-2)

    # is_cifar masking path (forward's out-of-task fill), task 1 of 5, 2 cls/task.
    out_masked = jax.block_until_ready(
        net_forward(x, prepared, is_cifar=True, task=1, nc_per_task=2,
                    n_outputs=n_outputs))
    ref_masked = _reference_forward(x, params, offset1=2, offset2=4)
    assert jnp.allclose(out_masked, ref_masked, atol=1e-2, rtol=1e-2)

    print("KERNEL_OK")
</pallas_src>

<mosaic_0001>
module attributes {stable_mosaic.version = 11 : i64} {
  func.func @_mlp_forward_kernel(%arg0: i32, %arg1: memref<2xi32, #tpu.memory_space<smem>>, %arg2: memref<16x784xf32, #tpu.memory_space<vmem>>, %arg3: memref<784x512xbf16, #tpu.memory_space<vmem>>, %arg4: memref<1x512xf32, #tpu.memory_space<vmem>>, %arg5: memref<512x512xbf16, #tpu.memory_space<vmem>>, %arg6: memref<1x512xf32, #tpu.memory_space<vmem>>, %arg7: memref<512x128xbf16, #tpu.memory_space<vmem>>, %arg8: memref<1x128xf32, #tpu.memory_space<vmem>>, %arg9: memref<16x128xf32, #tpu.memory_space<vmem>>) attributes {dimension_semantics = [#tpu.dimension_semantics<parallel>], iteration_bounds = array<i64: 1>, scalar_prefetch = 1 : i64, scratch_operands = 0 : i64, tpu.core_type = #tpu.core_type<tc>, window_params = [{transform_indices = @transform_0, window_bounds = array<i64: 16, 784>}, {pipeline_mode = #tpu.pipeline_mode<synchronous>, transform_indices = @transform_1, window_bounds = array<i64: 784, 512>}, {pipeline_mode = #tpu.pipeline_mode<synchronous>, transform_indices = @transform_2, window_bounds = array<i64: 1, 512>}, {pipeline_mode = #tpu.pipeline_mode<synchronous>, transform_indices = @transform_3, window_bounds = array<i64: 512, 512>}, {pipeline_mode = #tpu.pipeline_mode<synchronous>, transform_indices = @transform_4, window_bounds = array<i64: 1, 512>}, {pipeline_mode = #tpu.pipeline_mode<synchronous>, transform_indices = @transform_5, window_bounds = array<i64: 512, 128>}, {pipeline_mode = #tpu.pipeline_mode<synchronous>, transform_indices = @transform_6, window_bounds = array<i64: 1, 128>}, {transform_indices = @transform_7, window_bounds = array<i64: 16, 128>}]} {
    %c0 = arith.constant 0 : index
    %c0_0 = arith.constant 0 : index
    %0 = vector.load %arg2[%c0, %c0_0] : memref<16x784xf32, #tpu.memory_space<vmem>>, vector<16x784xf32>
    %1 = arith.truncf %0 : vector<16x784xf32> to vector<16x784xbf16>
    %c0_1 = arith.constant 0 : index
    %c0_2 = arith.constant 0 : index
    %2 = vector.load %arg3[%c0_1, %c0_2] : memref<784x512xbf16, #tpu.memory_space<vmem>>, vector<784x512xbf16>
    %cst = arith.constant dense<0.000000e+00> : vector<16x512xf32>
    %3 = tpu.matmul %1, %2, %cst {dimension_numbers = #tpu.dot_dimension_numbers<[1], [0], [0], [1], [0, 0, 1, 1], [], []>} : vector<16x784xbf16>, vector<784x512xbf16>, vector<16x512xf32> -> vector<16x512xf32>
    %c0_3 = arith.constant 0 : index
    %c0_4 = arith.constant 0 : index
    %4 = vector.load %arg4[%c0_3, %c0_4] : memref<1x512xf32, #tpu.memory_space<vmem>>, vector<1x512xf32>
    %5 = vector.broadcast %4 : vector<1x512xf32> to vector<16x512xf32>
    %6 = arith.addf %3, %5 : vector<16x512xf32>
    %cst_5 = arith.constant 0.000000e+00 : f32
    %7 = vector.broadcast %cst_5 : f32 to vector<16x512xf32>
    %8 = arith.maximumf %6, %7 : vector<16x512xf32>
    %9 = arith.truncf %8 : vector<16x512xf32> to vector<16x512xbf16>
    %c0_6 = arith.constant 0 : index
    %c0_7 = arith.constant 0 : index
    %10 = vector.load %arg5[%c0_6, %c0_7] : memref<512x512xbf16, #tpu.memory_space<vmem>>, vector<512x512xbf16>
    %cst_8 = arith.constant dense<0.000000e+00> : vector<16x512xf32>
    %11 = tpu.matmul %9, %10, %cst_8 {dimension_numbers = #tpu.dot_dimension_numbers<[1], [0], [0], [1], [0, 0, 1, 1], [], []>} : vector<16x512xbf16>, vector<512x512xbf16>, vector<16x512xf32> -> vector<16x512xf32>
    %c0_9 = arith.constant 0 : index
    %c0_10 = arith.constant 0 : index
    %12 = vector.load %arg6[%c0_9, %c0_10] : memref<1x512xf32, #tpu.memory_space<vmem>>, vector<1x512xf32>
    %13 = vector.broadcast %12 : vector<1x512xf32> to vector<16x512xf32>
    %14 = arith.addf %11, %13 : vector<16x512xf32>
    %cst_11 = arith.constant 0.000000e+00 : f32
    %15 = vector.broadcast %cst_11 : f32 to vector<16x512xf32>
    %16 = arith.maximumf %14, %15 : vector<16x512xf32>
    %17 = arith.truncf %16 : vector<16x512xf32> to vector<16x512xbf16>
    %c0_12 = arith.constant 0 : index
    %c0_13 = arith.constant 0 : index
    %18 = vector.load %arg7[%c0_12, %c0_13] : memref<512x128xbf16, #tpu.memory_space<vmem>>, vector<512x128xbf16>
    %cst_14 = arith.constant dense<0.000000e+00> : vector<16x128xf32>
    %19 = tpu.matmul %17, %18, %cst_14 {dimension_numbers = #tpu.dot_dimension_numbers<[1], [0], [0], [1], [0, 0, 1, 1], [], []>} : vector<16x512xbf16>, vector<512x128xbf16>, vector<16x128xf32> -> vector<16x128xf32>
    %c0_15 = arith.constant 0 : index
    %c0_16 = arith.constant 0 : index
    %20 = vector.load %arg8[%c0_15, %c0_16] : memref<1x128xf32, #tpu.memory_space<vmem>>, vector<1x128xf32>
    %21 = vector.broadcast %20 : vector<1x128xf32> to vector<16x128xf32>
    %22 = arith.addf %19, %21 : vector<16x128xf32>
    %23 = tpu.iota {dimensions = array<i32: 1>} : vector<16x128xi32>
    %c0_17 = arith.constant 0 : index
    %24 = memref.load %arg1[%c0_17] : memref<2xi32, #tpu.memory_space<smem>>
    %25 = vector.broadcast %24 : i32 to vector<16x128xi32>
    %26 = arith.cmpi slt, %23, %25 : vector<16x128xi32>
    %c1 = arith.constant 1 : index
    %27 = memref.load %arg1[%c1] : memref<2xi32, #tpu.memory_space<smem>>
    %28 = vector.broadcast %27 : i32 to vector<16x128xi32>
    %29 = arith.cmpi sge, %23, %28 : vector<16x128xi32>
    %30 = arith.ori %26, %29 : vector<16x128xi1>
    %cst_18 = arith.constant -9.99999979E+10 : f32
    %31 = vector.broadcast %cst_18 : f32 to vector<16x128xf32>
    %32 = arith.select %30, %31, %22 : vector<16x128xi1>, vector<16x128xf32>
    %c0_19 = arith.constant 0 : index
    %c0_20 = arith.constant 0 : index
    %33 = vector.load %arg9[%c0_19, %c0_20] : memref<16x128xf32, #tpu.memory_space<vmem>>, vector<16x128xf32>
    tpu.vector_store %arg9[%c0_19, %c0_20], %32 {strides = array<i32>} : memref<16x128xf32, #tpu.memory_space<vmem>>, vector<16x128xf32>,
    return
  }
  func.func @transform_0(%arg0: i32, %arg1: memref<2xi32, #tpu.memory_space<smem>>) -> (i32, i32) {
    %c0_i32 = arith.constant 0 : i32
    %c0_i32_0 = arith.constant 0 : i32
    return %arg0, %c0_i32 : i32, i32
  }
  func.func @transform_1(%arg0: i32, %arg1: memref<2xi32, #tpu.memory_space<smem>>) -> (i32, i32) {
    %c0_i32 = arith.constant 0 : i32
    %c0_i32_0 = arith.constant 0 : i32
    %c0_i32_1 = arith.constant 0 : i32
    return %c0_i32, %c0_i32_0 : i32, i32
  }
  func.func @transform_2(%arg0: i32, %arg1: memref<2xi32, #tpu.memory_space<smem>>) -> (i32, i32) {
    %c0_i32 = arith.constant 0 : i32
    %c0_i32_0 = arith.constant 0 : i32
    %c0_i32_1 = arith.constant 0 : i32
    return %c0_i32, %c0_i32_0 : i32, i32
  }
  func.func @transform_3(%arg0: i32, %arg1: memref<2xi32, #tpu.memory_space<smem>>) -> (i32, i32) {
    %c0_i32 = arith.constant 0 : i32
    %c0_i32_0 = arith.constant 0 : i32
    %c0_i32_1 = arith.constant 0 : i32
    return %c0_i32, %c0_i32_0 : i32, i32
  }
  func.func @transform_4(%arg0: i32, %arg1: memref<2xi32, #tpu.memory_space<smem>>) -> (i32, i32) {
    %c0_i32 = arith.constant 0 : i32
    %c0_i32_0 = arith.constant 0 : i32
    %c0_i32_1 = arith.constant 0 : i32
    return %c0_i32, %c0_i32_0 : i32, i32
  }
  func.func @transform_5(%arg0: i32, %arg1: memref<2xi32, #tpu.memory_space<smem>>) -> (i32, i32) {
    %c0_i32 = arith.constant 0 : i32
    %c0_i32_0 = arith.constant 0 : i32
    %c0_i32_1 = arith.constant 0 : i32
    return %c0_i32, %c0_i32_0 : i32, i32
  }
  func.func @transform_6(%arg0: i32, %arg1: memref<2xi32, #tpu.memory_space<smem>>) -> (i32, i32) {
    %c0_i32 = arith.constant 0 : i32
    %c0_i32_0 = arith.constant 0 : i32
    %c0_i32_1 = arith.constant 0 : i32
    return %c0_i32, %c0_i32_0 : i32, i32
  }
  func.func @transform_7(%arg0: i32, %arg1: memref<2xi32, #tpu.memory_space<smem>>) -> (i32, i32) {
    %c0_i32 = arith.constant 0 : i32
    %c0_i32_0 = arith.constant 0 : i32
    return %arg0, %c0_i32 : i32, i32
  }
}

</mosaic_0001>

<bundles_post_ra>
// kernel: tpu_custom_call.1
= control target key start
LH: loop header
LB: loop body
LE: loop exit
PB: predicated region body
PF: predicated region fallthrough
CT: control target
= control target key end

     0   :  { %s5059_s30 = smov [#allocation3]   ;;  %s5271_s0 = inlined_call_operand.hbm [shape: s32[2], index: 0, kind: input, shape index: {}]   ;;  %s5272_s1 = inlined_call_operand.hbm [shape: f32[16,784], index: 1, kind: input, shape index: {}]   ;;  %s5273_s2 = inlined_call_operand.hbm [shape: bf16[784,512], index: 2, kind: input, shape index: {}]   ;;  %s5274_s3 = inlined_call_operand.hbm [shape: f32[1,512], index: 3, kind: input, shape index: {}]   ;;  %s5275_s4 = inlined_call_operand.hbm [shape: bf16[512,512], index: 4, kind: input, shape index: {}]   ;;  %s5276_s5 = inlined_call_operand.vmem [shape: f32[1,512], index: 5, kind: input, shape index: {}]   ;;  %s5277_s6 = inlined_call_operand.hbm [shape: bf16[512,128], index: 6, kind: input, shape index: {}]   ;;  %s5278_s7 = inlined_call_operand.vmem [shape: f32[1,128], index: 7, kind: input, shape index: {}]   ;;  %s5279_s8 = inlined_call_operand.hbm [shape: f32[16,128], index: 8, kind: output, shape index: {}]  }
   0x1   :  { %s14_s29 = sshll.u32 %s5271_s0, 4  ;;  %s15_s29 = int_to_ptr.hbm [resolvable:$true] %s14_s29 }
   0x2   :  { %17 = dma.hbm_to_smem %s15_s29, 16, %s5059_s30, [#allocation2] }
   0x3   :  { %5049 = dma.done.wait [#allocation2], 16 }
   0x4   :  { %5050 = vsyncadd [#allocation2], 4294967280 }
   0x5   :  { %20 = sfence }
   0x6   :  { %21 = vsyncpa [#allocation5], 0 }
   0x7   :  { %22 = vsyncpa [#allocation8], 0 }
   0x8   :  { %23 = vsyncpa [#allocation11], 0  ;;  %s42_s11 = sshll.u32 %s5273_s2, 4  ;;  %s43_s11 = int_to_ptr.hbm [resolvable:$true] %s42_s11 }
   0x9   :  { %24 = vsyncpa [#allocation6], 0  ;;  %s5060_s12 = smov [#allocation7]   ;;  %s66_s15 = sshll.u32 %s5275_s4, 4  ;;  %s67_s15 = int_to_ptr.hbm [resolvable:$true] %s66_s15 }
   0xa   :  { %s44_s13 = sshll.u32 %s5060_s12, 4  ;;  %s5061_s16 = smov 256   ;;  %s45_s13 = int_to_ptr.vmem [resolvable:$true] %s44_s13 }
   0xb   :  { %s5062_s17 = smov 16   ;;  %s5063_s18 = smov [#allocation10]  }
   0xc   :  { %50 = dma.hbm_to_vmem [thread:$0]  %s43_s11, 25088, %s45_s13, [#allocation8], %s5061_s16, %s5061_s16, %s5062_s17  }
   0xd   :  { %s68_s19 = sshll.u32 %s5063_s18, 4  ;;  %s29_s22 = sshll.u32 %s5272_s1, 4  ;;  %s69_s19 = int_to_ptr.vmem [resolvable:$true] %s68_s19  ;;  %s30_s22 = int_to_ptr.hbm [resolvable:$true] %s29_s22 }
   0xe   :  { %74 = dma.hbm_to_vmem [thread:$0]  %s67_s15, 16384, %s69_s19, [#allocation11], %s5061_s16, %s5061_s16, %s5062_s17  }
   0xf   :  { %s5064_s2 = smov [#allocation4]   ;;  %s56_s4 = sshll.u32 %s5274_s3, 4  ;;  %s57_s4 = int_to_ptr.hbm [resolvable:$true] %s56_s4 }
  0x10   :  { %s31_s23 = sshll.u32 %s5064_s2, 4  ;;  %s5065_s26 = smov 896   ;;  %s32_s23 = int_to_ptr.vmem [resolvable:$true] %s31_s23 }
  0x11   :  { %s5066_s27 = smov 56   ;;  %s5067_s28 = smov [#allocation9]  }
  0x12   :  { %37 = dma.hbm_to_vmem [thread:$0]  %s30_s22, 1792, %s32_s23, [#allocation5], %s5065_s26, %s5065_s26, %s5066_s27  }
  0x13   :  { %s58_s29 = sshll.u32 %s5067_s28, 4  ;;  %s81_s1 = sshll.u32 %s5277_s6, 4  ;;  %s59_s29 = int_to_ptr.vmem [resolvable:$true] %s58_s29  ;;  %s82_s1 = int_to_ptr.hbm [resolvable:$true] %s81_s1 }
  0x14   :  { %61 = dma.hbm_to_vmem [thread:$0]  %s57_s4, 64, %s59_s29, [#allocation8]  }
  0x15   :  { %s5068_s10 = smov [#allocation12]   ;;  %s5069_s12 = smov 64  }
  0x16   :  { %s83_s11 = sshll.u32 %s5068_s10, 4  ;;  %s5070_s13 = smov 4   ;;  %s84_s11 = int_to_ptr.vmem [resolvable:$true] %s83_s11 }
  0x17   :  { %89 = dma.hbm_to_vmem [thread:$0]  %s82_s1, 4096, %s84_s11, [#allocation11], %s5069_s12, %s5069_s12, %s5070_s13  }
  0x18   :  { %5051 = dma.done.wait [#allocation5], 1792  }
  0x19   :  { %5052 = vsyncadd [#allocation5], 4294965504 }
  0x1a   :  { %5053 = dma.done.wait [#allocation8], 25152  }
  0x1b   :  { %5054 = vsyncadd [#allocation8], 4294942144 }
  0x1c   :  { %5055 = dma.done.wait [#allocation11], 20480  }
  0x1d   :  { %5056 = vsyncadd [#allocation11], 4294946816  ;;  %v3206_v0 = vld [vmem:[#allocation7 + $0xe0] sm:$0xf]  ;;  %v4551_v1 = vld [vmem:[#allocation7 + $0xec] sm:$0xf0] }
  0x1e   :  { %v3334_v2 = vld [vmem:[#allocation7 + $0x1e0] sm:$0xf]  ;;  %v3207_v3 = vor.u32 %v4551_v1, %v3206_v0  ;;  %v4583_v4 = vld [vmem:[#allocation7 + $0x1ec] sm:$0xf0]  ;;  %vm1320_vm0 = vcmask 130048   ;;  %s4520_s14 = sld [smem:[#allocation3 + $0x1]] }
  0x1f   :  { %v3462_v5 = vld [vmem:[#allocation7 + $0x2e0] sm:$0xf]  ;;  %v4615_v6 = vld [vmem:[#allocation7 + $0x2ec] sm:$0xf0]  ;;  %v3335_v7 = vor.u32 %v4583_v4, %v3334_v2  ;;  %s3077_s19 = sshll.u32 %s5279_s8, 4  ;;  %s5072_s20 = smov 128   ;;  %s3078_s19 = int_to_ptr.hbm [resolvable:$true] %s3077_s19 }
  0x20   :  { %v3463_v8 = vor.u32 %v4615_v6, %v3462_v5  ;;  %v3590_v9 = vld [vmem:[#allocation7 + $0x3e0] sm:$0xf]  ;;  %v4647_v10 = vld [vmem:[#allocation7 + $0x3ec] sm:$0xf0]  ;;  %1324 = vmatpush.bf16.msra.mxu0 %v3207_v3  ;;  %s5073_s21 = smov 8  }
  0x21   :  { %v3190_v11 = vld [vmem:[#allocation7 + $0xc0] sm:$0xf]  ;;  %v3591_v12 = vor.u32 %v4647_v10, %v3590_v9  ;;  %v4547_v13 = vld [vmem:[#allocation7 + $0xcc] sm:$0xf0]  ;;  %1338 = vmatpush.bf16.msra.mxu1 %v3335_v7 }
  0x22   :  { %v3318_v14 = vld [vmem:[#allocation7 + $0x1c0] sm:$0xf]  ;;  %v4579_v15 = vld [vmem:[#allocation7 + $0x1cc] sm:$0xf0]  ;;  %1352 = vmatpush.bf16.msra.mxu2 %v3463_v8  ;;  %v3191_v16 = vor.u32 %v4547_v13, %v3190_v11 }
  0x23   :  { %v3319_v17 = vor.u32 %v4579_v15, %v3318_v14  ;;  %v3446_v18 = vld [vmem:[#allocation7 + $0x2c0] sm:$0xf]  ;;  %v4611_v19 = vld [vmem:[#allocation7 + $0x2cc] sm:$0xf0]  ;;  %1366 = vmatpush.bf16.msra.mxu3 %v3591_v12 }
  0x24   :  { %v3574_v20 = vld [vmem:[#allocation7 + $0x3c0] sm:$0xf]  ;;  %v3447_v21 = vor.u32 %v4611_v19, %v3446_v18  ;;  %v4643_v22 = vld [vmem:[#allocation7 + $0x3cc] sm:$0xf0]  ;;  %1325 = vmatpush.bf16.msra.mxu0 %v3191_v16 }
  0x25   :  { %v3174_v23 = vld [vmem:[#allocation7 + $0xa0] sm:$0xf]  ;;  %v4543_v24 = vld [vmem:[#allocation7 + $0xac] sm:$0xf0]  ;;  %v3575_v25 = vor.u32 %v4643_v22, %v3574_v20  ;;  %1339 = vmatpush.bf16.msra.mxu1 %v3319_v17 }
  0x26   :  { %v3302_v26 = vld [vmem:[#allocation7 + $0x1a0] sm:$0xf]  ;;  %v4575_v27 = vld [vmem:[#allocation7 + $0x1ac] sm:$0xf0]  ;;  %v3175_v29 = vor.u32 %v4543_v24, %v3174_v23  ;;  %1353 = vmatpush.bf16.msra.mxu2 %v3447_v21 }
  0x27   :  { %v3430_v28 = vld [vmem:[#allocation7 + $0x2a0] sm:$0xf]  ;;  %v4607_v30 = vld [vmem:[#allocation7 + $0x2ac] sm:$0xf0]  ;;  %v3303_v33 = vor.u32 %v4575_v27, %v3302_v26  ;;  %1367 = vmatpush.bf16.msra.mxu3 %v3575_v25 }
  0x28   :  { %v3558_v31 = vld [vmem:[#allocation7 + $0x3a0] sm:$0xf]  ;;  %v4639_v32 = vld [vmem:[#allocation7 + $0x3ac] sm:$0xf0]  ;;  %v3431_v34 = vor.u32 %v4607_v30, %v3430_v28  ;;  %1326 = vmatpush.bf16.msra.mxu0 %v3175_v29 }
  0x29   :  { %v3158_v35 = vld [vmem:[#allocation7 + $0x80] sm:$0xf]  ;;  %v4539_v36 = vld [vmem:[#allocation7 + $0x8c] sm:$0xf0]  ;;  %v3559_v38 = vor.u32 %v4639_v32, %v3558_v31  ;;  %1340 = vmatpush.bf16.msra.mxu1 %v3303_v33  ;;  %v4549_v32 = vld [vmem:[#allocation7 + $0xe4] sm:$0xf] }
  0x2a   :  { %v3286_v37 = vld [vmem:[#allocation7 + $0x180] sm:$0xf]  ;;  %v4571_v39 = vld [vmem:[#allocation7 + $0x18c] sm:$0xf0]  ;;  %v3159_v44 = vor.u32 %v4539_v36, %v3158_v35  ;;  %1354 = vmatpush.bf16.msra.mxu2 %v3431_v34  ;;  %v3208_v33 = vld [vmem:[#allocation7 + $0xf0] sm:$0xf0] }
  0x2b   :  { %v3414_v40 = vld [vmem:[#allocation7 + $0x280] sm:$0xf]  ;;  %v4603_v41 = vld [vmem:[#allocation7 + $0x28c] sm:$0xf0]  ;;  %v3287_v45 = vor.u32 %v4571_v39, %v3286_v37  ;;  %1368 = vmatpush.bf16.msra.mxu3 %v3559_v38  ;;  %v122_v36 = vld [vmem:[#allocation4 + $0x48] sm:$0xff] }
  0x2c   :  { %v3542_v42 = vld [vmem:[#allocation7 + $0x380] sm:$0xf]  ;;  %v4635_v43 = vld [vmem:[#allocation7 + $0x38c] sm:$0xf0]  ;;  %v3415_v46 = vor.u32 %v4603_v41, %v3414_v40  ;;  %1327 = vmatpush.bf16.msra.mxu0 %v3159_v44  ;;  %v4581_v41 = vld [vmem:[#allocation7 + $0x1e4] sm:$0xf] }
  0x2d   :  { %v3142_v47 = vld [vmem:[#allocation7 + $0x60] sm:$0xf]  ;;  %v4535_v48 = vld [vmem:[#allocation7 + $0x6c] sm:$0xf0]  ;;  %v3543_v50 = vor.u32 %v4635_v43, %v3542_v42  ;;  %1341 = vmatpush.bf16.msra.mxu1 %v3287_v45  ;;  %v120_v43 = vld [vmem:[#allocation4 + $0x38] sm:$0xff] }
  0x2e   :  { %v3270_v49 = vld [vmem:[#allocation7 + $0x160] sm:$0xf]  ;;  %v4567_v51 = vld [vmem:[#allocation7 + $0x16c] sm:$0xf0]  ;;  %v3143_v56 = vor.u32 %v4535_v48, %v3142_v47  ;;  %1355 = vmatpush.bf16.msra.mxu2 %v3415_v46  ;;  %v3336_v46 = vld [vmem:[#allocation7 + $0x1f0] sm:$0xf0] }
  0x2f   :  { %v3398_v52 = vld [vmem:[#allocation7 + $0x260] sm:$0xf]  ;;  %v4599_v53 = vld [vmem:[#allocation7 + $0x26c] sm:$0xf0]  ;;  %v3271_v57 = vor.u32 %v4567_v51, %v3270_v49  ;;  %1369 = vmatpush.bf16.msra.mxu3 %v3543_v50  ;;  %v116_v47 = vld [vmem:[#allocation4 + $0x18] sm:$0xff]  ;;  %v3211_v50 = vor.u32 %v4549_v32, %v3208_v33 }
  0x30   :  { %v3526_v54 = vld [vmem:[#allocation7 + $0x360] sm:$0xf]  ;;  %v4631_v55 = vld [vmem:[#allocation7 + $0x36c] sm:$0xf0]  ;;  %v3399_v58 = vor.u32 %v4599_v53, %v3398_v52  ;;  %1328 = vmatpush.bf16.msra.mxu0 %v3143_v56 }
  0x31   :  { %v3126_v59 = vld [vmem:[#allocation7 + $0x40] sm:$0xf]  ;;  %v4531_v60 = vld [vmem:[#allocation7 + $0x4c] sm:$0xf0]  ;;  %v3527_v62 = vor.u32 %v4631_v55, %v3526_v54  ;;  %1342 = vmatpush.bf16.msra.mxu1 %v3271_v57  ;;  %v4545_v57 = vld [vmem:[#allocation7 + $0xc4] sm:$0xf] }
  0x32   :  { %v3254_v61 = vld [vmem:[#allocation7 + $0x140] sm:$0xf]  ;;  %v4563_v63 = vld [vmem:[#allocation7 + $0x14c] sm:$0xf0]  ;;  %v3127_v4 = vor.u32 %v4531_v60, %v3126_v59  ;;  %1356 = vmatpush.bf16.msra.mxu2 %v3399_v58  ;;  %v3192_v58 = vld [vmem:[#allocation7 + $0xd0] sm:$0xf0] }
  0x33   :  { %v3382_v0 = vld [vmem:[#allocation7 + $0x240] sm:$0xf]  ;;  %v4595_v1 = vld [vmem:[#allocation7 + $0x24c] sm:$0xf0]  ;;  %v3255_v6 = vor.u32 %v4563_v63, %v3254_v61  ;;  %1370 = vmatpush.bf16.msra.mxu3 %v3527_v62  ;;  %v114_v61 = vld [vmem:[#allocation4 + $0x8] sm:$0xff]  ;;  %v3339_v63 = vor.u32 %v4581_v41, %v3336_v46 }
  0x34   :  { %v3510_v2 = vld [vmem:[#allocation7 + $0x340] sm:$0xf]  ;;  %v4627_v3 = vld [vmem:[#allocation7 + $0x34c] sm:$0xf0]  ;;  %v3383_v7 = vor.u32 %v4595_v1, %v3382_v0  ;;  %1329 = vmatpush.bf16.msra.mxu0 %v3127_v4  ;;  %v4577_v1 = vld [vmem:[#allocation7 + $0x1c4] sm:$0xf]  ;;  %v3195_v4 = vor.u32 %v4545_v57, %v3192_v58 }
  0x35   :  { %v3110_v5 = vld [vmem:[#allocation7 + $0x20] sm:$0xf]  ;;  %v4527_v8 = vld [vmem:[#allocation7 + $0x2c] sm:$0xf0]  ;;  %v3511_v11 = vor.u32 %v4627_v3, %v3510_v2  ;;  %1343 = vmatpush.bf16.msra.mxu1 %v3255_v6  ;;  %v3320_v2 = vld [vmem:[#allocation7 + $0x1d0] sm:$0xf0] }
  0x36   :  { %v3238_v9 = vld [vmem:[#allocation7 + $0x120] sm:$0xf]  ;;  %v4559_v10 = vld [vmem:[#allocation7 + $0x12c] sm:$0xf0]  ;;  %v3111_v18 = vor.u32 %v4527_v8, %v3110_v5  ;;  %1357 = vmatpush.bf16.msra.mxu2 %v3383_v7  ;;  %v3272_v41 = vld [vmem:[#allocation7 + $0x170] sm:$0xf0] }
  0x37   :  { %v3366_v12 = vld [vmem:[#allocation7 + $0x220] sm:$0xf]  ;;  %v4591_v13 = vld [vmem:[#allocation7 + $0x22c] sm:$0xf0]  ;;  %v3239_v23 = vor.u32 %v4559_v10, %v3238_v9  ;;  %1371 = vmatpush.bf16.msra.mxu3 %v3511_v11  ;;  %v4541_v10 = vld [vmem:[#allocation7 + $0xa4] sm:$0xf] }
  0x38   :  { %v3494_v14 = vld [vmem:[#allocation7 + $0x320] sm:$0xf]  ;;  %v4623_v15 = vld [vmem:[#allocation7 + $0x32c] sm:$0xf0]  ;;  %v3367_v24 = vor.u32 %v4591_v13, %v3366_v12  ;;  %1330 = vmatpush.bf16.msra.mxu0 %v3111_v18  ;;  %v3176_v11 = vld [vmem:[#allocation7 + $0xb0] sm:$0xf0]  ;;  %v3323_v12 = vor.u32 %v4577_v1, %v3320_v2 }
  0x39   :  { %v3094_v16 = vld [vmem:[#allocation7] sm:$0xf]  ;;  %v4523_v17 = vld [vmem:[#allocation7 + $0xc] sm:$0xf0]  ;;  %v3495_v28 = vor.u32 %v4623_v15, %v3494_v14  ;;  %1344 = vmatpush.bf16.msra.mxu1 %v3239_v23  ;;  %v4573_v14 = vld [vmem:[#allocation7 + $0x1a4] sm:$0xf] }
  0x3a   :  { %v3222_v19 = vld [vmem:[#allocation7 + $0x100] sm:$0xf]  ;;  %v4555_v20 = vld [vmem:[#allocation7 + $0x10c] sm:$0xf0]  ;;  %v3095_v35 = vor.u32 %v4523_v17, %v3094_v16  ;;  %1358 = vmatpush.bf16.msra.mxu2 %v3367_v24  ;;  %v3304_v15 = vld [vmem:[#allocation7 + $0x1b0] sm:$0xf0]  ;;  %v3179_v17 = vor.u32 %v4541_v10, %v3176_v11 }
  0x3b   :  { %v3350_v21 = vld [vmem:[#allocation7 + $0x200] sm:$0xf]  ;;  %v4587_v22 = vld [vmem:[#allocation7 + $0x20c] sm:$0xf0]  ;;  %v3223_v39 = vor.u32 %v4555_v20, %v3222_v19  ;;  %1372 = vmatpush.bf16.msra.mxu3 %v3495_v28  ;;  %v3160_v23 = vld [vmem:[#allocation7 + $0x90] sm:$0xf0]  ;;  %v3307_v24 = vor.u32 %v4573_v14, %v3304_v15 }
  0x3c   :  { %v3478_v25 = vld [vmem:[#allocation7 + $0x300] sm:$0xf]  ;;  %v4619_v26 = vld [vmem:[#allocation7 + $0x30c] sm:$0xf0]  ;;  %v3351_v40 = vor.u32 %v4587_v22, %v3350_v21  ;;  %1331 = vmatpush.bf16.msra.mxu0 %v3095_v35  ;;  %v4537_v22 = vld [vmem:[#allocation7 + $0x84] sm:$0xf] }
  0x3d   :  { %v3718_v27 = vld [vmem:[#allocation7 + $0x4e0] sm:$0xf]  ;;  %v4679_v29 = vld [vmem:[#allocation7 + $0x4ec] sm:$0xf0]  ;;  %v3479_v44 = vor.u32 %v4619_v26, %v3478_v25  ;;  %1345 = vmatpush.bf16.msra.mxu1 %v3223_v39  ;;  %v4569_v26 = vld [vmem:[#allocation7 + $0x184] sm:$0xf] }
  0x3e   :  { %v3846_v30 = vld [vmem:[#allocation7 + $0x5e0] sm:$0xf]  ;;  %v4711_v31 = vld [vmem:[#allocation7 + $0x5ec] sm:$0xf0]  ;;  %v3719_v45 = vor.u32 %v4679_v29, %v3718_v27  ;;  %1359 = vmatpush.bf16.msra.mxu2 %v3351_v40  ;;  %v3288_v27 = vld [vmem:[#allocation7 + $0x190] sm:$0xf0]  ;;  %v3163_v29 = vor.u32 %v4537_v22, %v3160_v23 }
  0x3f   :  { %v115_v34 = vld [vmem:[#allocation4 + $0x10] sm:$0xff]  ;;  %v4715_v38 = vld [vmem:[#allocation7 + $0x60c] sm:$0xf0]  ;;  %v3847_v49 = vor.u32 %v4711_v31, %v3846_v30  ;;  %1373 = vmatpush.bf16.msra.mxu3 %v3479_v44  ;;  %v3144_v35 = vld [vmem:[#allocation7 + $0x70] sm:$0xf0] }
  0x40   :  { %v3862_v37 = vld [vmem:[#allocation7 + $0x600] sm:$0xf]  ;;  %v113_v42 = vld [vmem:[#allocation4] sm:$0xff]  ;;  %v5137_v54 = vpack.c.bf16 %v122_v36, %v115_v34  ;;  %1380 = vmatpush.bf16.msrb.mxu0 %v3719_v45  ;;  %v4533_v34 = vld [vmem:[#allocation7 + $0x64] sm:$0xf] }
  0x41   :  { %v123_v48 = vld [vmem:[#allocation4 + $0x50] sm:$0xff]  ;;  %v4675_v52 = vld [vmem:[#allocation7 + $0x4cc] sm:$0xf0]  ;;  %v5139_v55 = vpack.c.bf16 %v120_v43, %v113_v42  ;;  %v3863_v59 = vor.u32 %v4715_v38, %v3862_v37  ;;  %1394 = vmatpush.bf16.msrb.mxu1 %v3847_v49  ;;  %v126_v37 = vld [vmem:[#allocation4 + $0x68] sm:$0xff]  ;;  %v3291_v38 = vor.u32 %v4569_v26, %v3288_v27  ;;  %v3147_v43 = vor.u32 %v4533_v34, %v3144_v35 }
  0x42   :  { %v3702_v51 = vld [vmem:[#allocation7 + $0x4c0] sm:$0xf]  ;;  %v4707_v56 = vld [vmem:[#allocation7 + $0x5cc] sm:$0xf0]  ;;  %v5141_v60 = vpack.c.bf16 %v123_v48, %v116_v47  ;;  %1360 = vmatmul.bf16.vlgmr.msra.gmra.mxu2 %v5137_v54  ;;  %v4565_v40 = vld [vmem:[#allocation7 + $0x164] sm:$0xf] }
  0x43   :  { %v3830_v53 = vld [vmem:[#allocation7 + $0x5c0] sm:$0xf]  ;;  %v121_v62 = vld [vmem:[#allocation4 + $0x40] sm:$0xff]  ;;  %v3703_v0 = vor.u32 %v4675_v52, %v3702_v51  ;;  %1422 = vmatpush.bf16.msrb.mxu3 %v3211_v50  ;;  %1332 = vmatmul.bf16.vlgmr.msra.gmra.mxu0 %v5139_v55  ;;  %v4529_v48 = vld [vmem:[#allocation7 + $0x44] sm:$0xf]  ;;  %v3275_v51 = vor.u32 %v4565_v40, %v3272_v41 }
  0x44   :  { %v3831_v3 = vor.u32 %v4707_v56, %v3830_v53  ;;  %v3686_v5 = vld [vmem:[#allocation7 + $0x4a0] sm:$0xf]  ;;  %v4671_v6 = vld [vmem:[#allocation7 + $0x4ac] sm:$0xf0]  ;;  %v5145_v8 = vpack.c.bf16 %v121_v62, %v114_v61  ;;  %1415 = vmatpush.bf16.msrb.mxu2 %v3863_v59  ;;  %1374 = vmatmul.bf16.vlgmr.msra.gmra.mxu3 %v5141_v60  ;;  %v3128_v49 = vld [vmem:[#allocation7 + $0x50] sm:$0xf0] }
  0x45   :  { %v3814_v7 = vld [vmem:[#allocation7 + $0x5a0] sm:$0xf]  ;;  %v4703_v9 = vld [vmem:[#allocation7 + $0x5ac] sm:$0xf0]  ;;  %1381 = vmatpush.bf16.msrb.mxu0 %v3703_v0  ;;  %v3687_v13 = vor.u32 %v4671_v6, %v3686_v5  ;;  %v4561_v53 = vld [vmem:[#allocation7 + $0x144] sm:$0xf]  ;;  %v3131_v58 = vor.u32 %v4529_v48, %v3128_v49 }
  0x46   :  { %1395 = vmatpush.bf16.msrb.mxu1 %v3831_v3  ;;  %v3815_v16 = vor.u32 %v4703_v9, %v3814_v7  ;;  %v3670_v18 = vld [vmem:[#allocation7 + $0x480] sm:$0xf]  ;;  %v4667_v19 = vld [vmem:[#allocation7 + $0x48c] sm:$0xf0]  ;;  %v3256_v56 = vld [vmem:[#allocation7 + $0x150] sm:$0xf0] }
  0x47   :  { %1423 = vmatpush.bf16.msrb.mxu3 %v3195_v4  ;;  %v3798_v20 = vld [vmem:[#allocation7 + $0x580] sm:$0xf]  ;;  %1346 = vmatmul.bf16.vlgmr.msra.gmra.mxu1 %v5145_v8  ;;  %v4699_v21 = vld [vmem:[#allocation7 + $0x58c] sm:$0xf0]  ;;  %v3671_v25 = vor.u32 %v4667_v19, %v3670_v18  ;;  %v4525_v0 = vld [vmem:[#allocation7 + $0x24] sm:$0xf]  ;;  %v3259_v4 = vor.u32 %v4561_v53, %v3256_v56 }
  0x48   :  { %1436 = vmatpush.bf16.msra.mxu2 %v3339_v63  ;;  %v3799_v28 = vor.u32 %v4699_v21, %v3798_v20  ;;  %v3654_v30 = vld [vmem:[#allocation7 + $0x460] sm:$0xf]  ;;  %v4663_v31 = vld [vmem:[#allocation7 + $0x46c] sm:$0xf0]  ;;  %v3112_v1 = vld [vmem:[#allocation7 + $0x30] sm:$0xf0] }
  0x49   :  { %1382 = vmatpush.bf16.msrb.mxu0 %v3687_v13  ;;  %v3782_v32 = vld [vmem:[#allocation7 + $0x560] sm:$0xf]  ;;  %v4695_v33 = vld [vmem:[#allocation7 + $0x56c] sm:$0xf0]  ;;  %v3655_v39 = vor.u32 %v4663_v31, %v3654_v30  ;;  %v4557_v2 = vld [vmem:[#allocation7 + $0x124] sm:$0xf]  ;;  %v3115_v11 = vor.u32 %v4525_v0, %v3112_v1 }
  0x4a   :  { %1396 = vmatpush.bf16.msrb.mxu1 %v3815_v16  ;;  %v119_v36 = vld [vmem:[#allocation4 + $0x30] sm:$0xff]  ;;  %v3783_v42 = vor.u32 %v4695_v33, %v3782_v32  ;;  %v4659_v45 = vld [vmem:[#allocation7 + $0x44c] sm:$0xf0]  ;;  %v3240_v3 = vld [vmem:[#allocation7 + $0x130] sm:$0xf0] }
  0x4b   :  { %1424 = vmatpush.bf16.msrb.mxu3 %v3179_v17  ;;  %v3638_v44 = vld [vmem:[#allocation7 + $0x440] sm:$0xf]  ;;  %v4691_v47 = vld [vmem:[#allocation7 + $0x54c] sm:$0xf0]  ;;  %v5149_v50 = vpack.c.bf16 %v126_v37, %v119_v36  ;;  %v4521_v13 = vld [vmem:[#allocation7 + $0x4] sm:$0xf]  ;;  %v3243_v21 = vor.u32 %v4557_v2, %v3240_v3 }
  0x4c   :  { %1437 = vmatpush.bf16.msra.mxu2 %v3323_v12  ;;  %v3766_v46 = vld [vmem:[#allocation7 + $0x540] sm:$0xf]  ;;  %v3639_v52 = vor.u32 %v4659_v45, %v3638_v44  ;;  %v4655_v61 = vld [vmem:[#allocation7 + $0x42c] sm:$0xf0]  ;;  %v3096_v14 = vld [vmem:[#allocation7 + $0x10] sm:$0xf0] }
  0x4d   :  { %1383 = vmatpush.bf16.msrb.mxu0 %v3671_v25  ;;  %v3767_v57 = vor.u32 %v4691_v47, %v3766_v46  ;;  %v3622_v59 = vld [vmem:[#allocation7 + $0x420] sm:$0xf]  ;;  %v4687_v63 = vld [vmem:[#allocation7 + $0x52c] sm:$0xf0]  ;;  %v4613_v15 = vld [vmem:[#allocation7 + $0x2e4] sm:$0xf]  ;;  %v3099_v27 = vor.u32 %v4521_v13, %v3096_v14 }
  0x4e   :  { %1397 = vmatpush.bf16.msrb.mxu1 %v3799_v28  ;;  %v3750_v62 = vld [vmem:[#allocation7 + $0x520] sm:$0xf]  ;;  %v3623_v5 = vor.u32 %v4655_v61, %v3622_v59  ;;  %v4651_v7 = vld [vmem:[#allocation7 + $0x40c] sm:$0xf0]  ;;  %v3464_v16 = vld [vmem:[#allocation7 + $0x2f0] sm:$0xf0] }
  0x4f   :  { %1425 = vmatpush.bf16.msrb.mxu3 %v3163_v29  ;;  %v3606_v6 = vld [vmem:[#allocation7 + $0x400] sm:$0xf]  ;;  %v3751_v10 = vor.u32 %v4687_v63, %v3750_v62  ;;  %v4683_v12 = vld [vmem:[#allocation7 + $0x50c] sm:$0xf0]  ;;  %v4645_v17 = vld [vmem:[#allocation7 + $0x3e4] sm:$0xf]  ;;  %v3467_v31 = vor.u32 %v4613_v15, %v3464_v16 }
  0x50   :  { %1438 = vmatpush.bf16.msra.mxu2 %v3307_v24  ;;  %v3734_v9 = vld [vmem:[#allocation7 + $0x500] sm:$0xf]  ;;  %v3592_v18 = vld [vmem:[#allocation7 + $0x3f0] sm:$0xf0]  ;;  %v4677_v19 = vld [vmem:[#allocation7 + $0x4e4] sm:$0xf]  ;;  %v3607_v22 = vor.u32 %v4651_v7, %v3606_v6 }
  0x51   :  { %1384 = vmatpush.bf16.msrb.mxu0 %v3655_v39  ;;  %v3720_v20 = vld [vmem:[#allocation7 + $0x4f0] sm:$0xf0]  ;;  %v124_v24 = vld [vmem:[#allocation4 + $0x58] sm:$0xff]  ;;  %v4553_v25 = vld [vmem:[#allocation7 + $0x104] sm:$0xf]  ;;  %v3735_v26 = vor.u32 %v4683_v12, %v3734_v9  ;;  %v3595_v32 = vor.u32 %v4645_v17, %v3592_v18 }
  0x52   :  { %1398 = vmatpush.bf16.msrb.mxu1 %v3783_v42  ;;  %3876 = vmatmul.msk.bf16.vlgmr.msrb.gmra.mxu2 %vm1320_vm0, %v5149_v50  ;;  %v117_v23 = vld [vmem:[#allocation4 + $0x20] sm:$0xff]  ;;  %v118_v29 = vld [vmem:[#allocation4 + $0x28] sm:$0xff]  ;;  %v4709_v33 = vld [vmem:[#allocation7 + $0x5e4] sm:$0xf]  ;;  %v3723_v36 = vor.u32 %v4677_v19, %v3720_v20 }
  0x53   :  { %1426 = vmatpush.bf16.msrb.mxu3 %v3147_v43  ;;  %v3224_v28 = vld [vmem:[#allocation7 + $0x110] sm:$0xf0]  ;;  %v4609_v35 = vld [vmem:[#allocation7 + $0x2c4] sm:$0xf]  ;;  %v5153_v37 = vpack.c.bf16 %v124_v24, %v117_v23 }
  0x54   :  { %1439 = vmatpush.bf16.msra.mxu2 %v3291_v38  ;;  %v125_v30 = vld [vmem:[#allocation4 + $0x60] sm:$0xff]  ;;  %v4641_v39 = vld [vmem:[#allocation7 + $0x3c4] sm:$0xf]  ;;  %v3227_v41 = vor.u32 %v4553_v25, %v3224_v28 }
  0x55   :  { %1385 = vmatpush.bf16.msrb.mxu0 %v3639_v52  ;;  %v3848_v34 = vld [vmem:[#allocation7 + $0x5f0] sm:$0xf0]  ;;  %v5155_v42 = vpack.c.bf16 %v125_v30, %v118_v29  ;;  %v4673_v43 = vld [vmem:[#allocation7 + $0x4c4] sm:$0xf] }
  0x56   :  { %1399 = vmatpush.bf16.msrb.mxu1 %v3767_v57  ;;  %v3448_v38 = vld [vmem:[#allocation7 + $0x2d0] sm:$0xf0]  ;;  %v3851_v45 = vor.u32 %v4709_v33, %v3848_v34  ;;  %v4705_v48 = vld [vmem:[#allocation7 + $0x5c4] sm:$0xf] }
  0x57   :  { %1427 = vmatpush.bf16.msrb.mxu3 %v3131_v58  ;;  %v3576_v40 = vld [vmem:[#allocation7 + $0x3d0] sm:$0xf0]  ;;  %v3451_v46 = vor.u32 %v4609_v35, %v3448_v38  ;;  %v4637_v56 = vld [vmem:[#allocation7 + $0x3a4] sm:$0xf] }
  0x58   :  { %1440 = vmatpush.bf16.msra.mxu2 %v3275_v51  ;;  %v3704_v44 = vld [vmem:[#allocation7 + $0x4d0] sm:$0xf0]  ;;  %v3579_v47 = vor.u32 %v4641_v39, %v3576_v40  ;;  %v4605_v51 = vld [vmem:[#allocation7 + $0x2a4] sm:$0xf] }
  0x59   :  { %1386 = vmatpush.bf16.msrb.mxu0 %v3623_v5  ;;  %v3832_v49 = vld [vmem:[#allocation7 + $0x5d0] sm:$0xf0]  ;;  %v3707_v52 = vor.u32 %v4673_v43, %v3704_v44  ;;  %v4669_v58 = vld [vmem:[#allocation7 + $0x4a4] sm:$0xf] }
  0x5a   :  { %1400 = vmatpush.bf16.msrb.mxu1 %v3751_v10  ;;  %v3432_v53 = vld [vmem:[#allocation7 + $0x2b0] sm:$0xf0]  ;;  %v3835_v61 = vor.u32 %v4705_v48, %v3832_v49  ;;  %v4701_v0 = vld [vmem:[#allocation7 + $0x5a4] sm:$0xf] }
  0x5b   :  { %1428 = vmatpush.bf16.msrb.mxu3 %v3115_v11  ;;  %v3560_v57 = vld [vmem:[#allocation7 + $0x3b0] sm:$0xf0]  ;;  %v3435_v62 = vor.u32 %v4605_v51, %v3432_v53  ;;  %v4601_v2 = vld [vmem:[#allocation7 + $0x284] sm:$0xf] }
  0x5c   :  { %1441 = vmatpush.bf16.msra.mxu2 %v3259_v4  ;;  %v3688_v59 = vld [vmem:[#allocation7 + $0x4b0] sm:$0xf0]  ;;  %v3563_v63 = vor.u32 %v4637_v56, %v3560_v57  ;;  %v4633_v5 = vld [vmem:[#allocation7 + $0x384] sm:$0xf] }
  0x5d   :  { %1387 = vmatpush.bf16.msrb.mxu0 %v3607_v22  ;;  %v3816_v1 = vld [vmem:[#allocation7 + $0x5b0] sm:$0xf0]  ;;  %v3691_v3 = vor.u32 %v4669_v58, %v3688_v59  ;;  %v4665_v7 = vld [vmem:[#allocation7 + $0x484] sm:$0xf] }
  0x5e   :  { %1401 = vmatpush.bf16.msrb.mxu1 %v3735_v26  ;;  %v3416_v4 = vld [vmem:[#allocation7 + $0x290] sm:$0xf0]  ;;  %v3819_v10 = vor.u32 %v4701_v0, %v3816_v1  ;;  %v4697_v13 = vld [vmem:[#allocation7 + $0x584] sm:$0xf]  ;;  %v3214_v0 = vld [vmem:[#allocation7 + $0xe8] sm:$0xf] }
  0x5f   :  { %1429 = vmatpush.bf16.msrb.mxu3 %v3099_v27  ;;  %v3544_v6 = vld [vmem:[#allocation7 + $0x390] sm:$0xf0]  ;;  %v3419_v11 = vor.u32 %v4601_v2, %v3416_v4  ;;  %v4597_v15 = vld [vmem:[#allocation7 + $0x264] sm:$0xf]  ;;  %v4552_v1 = vld [vmem:[#allocation7 + $0xf4] sm:$0xf0] }
  0x60   :  { %1442 = vmatpush.bf16.msra.mxu2 %v3243_v21  ;;  %1388 = vmatmul.bf16.vlgmr.msrb.gmra.mxu0 %v5153_v37  ;;  %v3672_v9 = vld [vmem:[#allocation7 + $0x490] sm:$0xf0]  ;;  %v3547_v12 = vor.u32 %v4633_v5, %v3544_v6  ;;  %v4629_v18 = vld [vmem:[#allocation7 + $0x364] sm:$0xf]  ;;  %v3470_v5 = vld [vmem:[#allocation7 + $0x2e8] sm:$0xf] }
  0x61   :  { %1450 = vmatpush.bf16.msra.mxu0 %v3467_v31  ;;  %1402 = vmatmul.bf16.vlgmr.msrb.gmra.mxu1 %v5155_v42  ;;  %v3800_v14 = vld [vmem:[#allocation7 + $0x590] sm:$0xf0]  ;;  %v3675_v16 = vor.u32 %v4665_v7, %v3672_v9  ;;  %v4661_v20 = vld [vmem:[#allocation7 + $0x464] sm:$0xf]  ;;  %v4616_v6 = vld [vmem:[#allocation7 + $0x2f4] sm:$0xf0] }
  0x62   :  { %1464 = vmatpush.bf16.msra.mxu1 %v3595_v32  ;;  %1430 = vmatmul.bf16.vlgmr.msrb.gmra.mxu3 %v5139_v55  ;;  %v3400_v17 = vld [vmem:[#allocation7 + $0x270] sm:$0xf0]  ;;  %v3803_v22 = vor.u32 %v4697_v13, %v3800_v14  ;;  %v4693_v25 = vld [vmem:[#allocation7 + $0x564] sm:$0xf]  ;;  %v3215_v13 = vor.u32 %v4552_v1, %v3214_v0  ;;  %v3598_v14 = vld [vmem:[#allocation7 + $0x3e8] sm:$0xf] }
  0x63   :  { %1478 = vmatpush.bf16.msra.mxu3 %v3723_v36  ;;  %v3528_v19 = vld [vmem:[#allocation7 + $0x370] sm:$0xf0]  ;;  %v3403_v23 = vor.u32 %v4597_v15, %v3400_v17  ;;  %v4593_v27 = vld [vmem:[#allocation7 + $0x244] sm:$0xf]  ;;  %v4648_v15 = vld [vmem:[#allocation7 + $0x3f4] sm:$0xf0] }
  0x64   :  { %1443 = vmatpush.bf16.msra.mxu2 %v3227_v41  ;;  %v3656_v21 = vld [vmem:[#allocation7 + $0x470] sm:$0xf0]  ;;  %v3531_v24 = vor.u32 %v4629_v18, %v3528_v19  ;;  %v4625_v30 = vld [vmem:[#allocation7 + $0x344] sm:$0xf]  ;;  %v3342_v17 = vld [vmem:[#allocation7 + $0x1e8] sm:$0xf]  ;;  %v3471_v19 = vor.u32 %v4616_v6, %v3470_v5 }
  0x65   :  { %1451 = vmatpush.bf16.msra.mxu0 %v3451_v46  ;;  %v3784_v26 = vld [vmem:[#allocation7 + $0x570] sm:$0xf0]  ;;  %v3659_v28 = vor.u32 %v4661_v20, %v3656_v21  ;;  %v4657_v32 = vld [vmem:[#allocation7 + $0x444] sm:$0xf]  ;;  %v4584_v18 = vld [vmem:[#allocation7 + $0x1f4] sm:$0xf0] }
  0x66   :  { %1465 = vmatpush.bf16.msra.mxu1 %v3579_v47  ;;  %v3384_v29 = vld [vmem:[#allocation7 + $0x250] sm:$0xf0]  ;;  %v3787_v34 = vor.u32 %v4693_v25, %v3784_v26  ;;  %v4689_v38 = vld [vmem:[#allocation7 + $0x544] sm:$0xf]  ;;  %v3198_v21 = vld [vmem:[#allocation7 + $0xc8] sm:$0xf]  ;;  %v3343_v26 = vor.u32 %v4584_v18, %v3342_v17 }
  0x67   :  { %1479 = vmatpush.bf16.msra.mxu3 %v3707_v52  ;;  %1444 = vmatmul.bf16.vlgmr.msra.gmra.mxu2 %v5145_v8  ;;  %v3512_v31 = vld [vmem:[#allocation7 + $0x350] sm:$0xf0]  ;;  %v3387_v35 = vor.u32 %v4593_v27, %v3384_v29  ;;  %v4589_v40 = vld [vmem:[#allocation7 + $0x224] sm:$0xf]  ;;  %v4612_v25 = vld [vmem:[#allocation7 + $0x2d4] sm:$0xf0] }
  0x68   :  { %1492 = vmatpush.bf16.msrb.mxu2 %v3851_v45  ;;  %v3640_v33 = vld [vmem:[#allocation7 + $0x450] sm:$0xf0]  ;;  %v3515_v36 = vor.u32 %v4625_v30, %v3512_v31  ;;  %v4621_v44 = vld [vmem:[#allocation7 + $0x324] sm:$0xf]  ;;  %v3582_v27 = vld [vmem:[#allocation7 + $0x3c8] sm:$0xf] }
  0x69   :  { %1452 = vmatpush.bf16.msra.mxu0 %v3435_v62  ;;  %v3768_v39 = vld [vmem:[#allocation7 + $0x550] sm:$0xf0]  ;;  %v3643_v41 = vor.u32 %v4657_v32, %v3640_v33  ;;  %v4653_v46 = vld [vmem:[#allocation7 + $0x424] sm:$0xf]  ;;  %v3326_v30 = vld [vmem:[#allocation7 + $0x1c8] sm:$0xf] }
  0x6a   :  { %1466 = vmatpush.bf16.msra.mxu1 %v3563_v63  ;;  %v3368_v43 = vld [vmem:[#allocation7 + $0x230] sm:$0xf0]  ;;  %v3771_v48 = vor.u32 %v4689_v38, %v3768_v39  ;;  %v4685_v49 = vld [vmem:[#allocation7 + $0x524] sm:$0xf]  ;;  %v4580_v31 = vld [vmem:[#allocation7 + $0x1d4] sm:$0xf0] }
  0x6b   :  { %1480 = vmatpush.bf16.msra.mxu3 %v3691_v3  ;;  %v3496_v45 = vld [vmem:[#allocation7 + $0x330] sm:$0xf0]  ;;  %v3371_v52 = vor.u32 %v4589_v40, %v3368_v43  ;;  %v4585_v56 = vld [vmem:[#allocation7 + $0x204] sm:$0xf]  ;;  %v3182_v33 = vld [vmem:[#allocation7 + $0xa8] sm:$0xf]  ;;  %v3327_v39 = vor.u32 %v4580_v31, %v3326_v30 }
  0x6c   :  { %1493 = vmatpush.bf16.msrb.mxu2 %v3835_v61  ;;  %v3624_v47 = vld [vmem:[#allocation7 + $0x430] sm:$0xf0]  ;;  %v3499_v53 = vor.u32 %v4621_v44, %v3496_v45  ;;  %v4617_v58 = vld [vmem:[#allocation7 + $0x304] sm:$0xf]  ;;  %v4608_v38 = vld [vmem:[#allocation7 + $0x2b4] sm:$0xf0] }
  0x6d   :  { %1453 = vmatpush.bf16.msra.mxu0 %v3419_v11  ;;  %v3752_v51 = vld [vmem:[#allocation7 + $0x530] sm:$0xf0]  ;;  %v3627_v59 = vor.u32 %v4653_v46, %v3624_v47  ;;  %v4649_v62 = vld [vmem:[#allocation7 + $0x404] sm:$0xf]  ;;  %v3566_v40 = vld [vmem:[#allocation7 + $0x3a8] sm:$0xf] }
  0x6e   :  { %1467 = vmatpush.bf16.msra.mxu1 %v3547_v12  ;;  %v3352_v57 = vld [vmem:[#allocation7 + $0x210] sm:$0xf0]  ;;  %v4713_v2 = vld [vmem:[#allocation7 + $0x604] sm:$0xf]  ;;  %v3755_v3 = vor.u32 %v4685_v49, %v3752_v51  ;;  %v3310_v44 = vld [vmem:[#allocation7 + $0x1a8] sm:$0xf] }
  0x6f   :  { %1481 = vmatpush.bf16.msra.mxu3 %v3675_v16  ;;  %v3480_v61 = vld [vmem:[#allocation7 + $0x310] sm:$0xf0]  ;;  %v3355_v7 = vor.u32 %v4585_v56, %v3352_v57  ;;  %v4576_v45 = vld [vmem:[#allocation7 + $0x1b4] sm:$0xf0]  ;;  %v3166_v47 = vld [vmem:[#allocation7 + $0x88] sm:$0xf] }
  0x70   :  { %1494 = vmatpush.bf16.msrb.mxu2 %v3819_v10  ;;  %v3608_v63 = vld [vmem:[#allocation7 + $0x410] sm:$0xf0]  ;;  %v3483_v9 = vor.u32 %v4617_v58, %v3480_v61  ;;  %v4681_v10 = vld [vmem:[#allocation7 + $0x504] sm:$0xf]  ;;  %v3422_v51 = vld [vmem:[#allocation7 + $0x288] sm:$0xf] }
  0x71   :  { %1454 = vmatpush.bf16.msra.mxu0 %v3403_v23  ;;  %v3864_v4 = vld [vmem:[#allocation7 + $0x610] sm:$0xf0]  ;;  %v3611_v12 = vor.u32 %v4649_v62, %v3608_v63  ;;  %v3599_v23 = vor.u32 %v4648_v15, %v3598_v14  ;;  %v3550_v56 = vld [vmem:[#allocation7 + $0x388] sm:$0xf]  ;;  %v4636_v57 = vld [vmem:[#allocation7 + $0x394] sm:$0xf0] }
  0x72   :  { %1468 = vmatpush.bf16.msra.mxu1 %v3531_v24  ;;  %v3736_v11 = vld [vmem:[#allocation7 + $0x510] sm:$0xf0]  ;;  %v3867_v16 = vor.u32 %v4713_v2, %v3864_v4  ;;  %v3454_v24 = vld [vmem:[#allocation7 + $0x2c8] sm:$0xf]  ;;  %v4572_v61 = vld [vmem:[#allocation7 + $0x194] sm:$0xf0]  ;;  %v3551_v1 = vor.u32 %v4636_v57, %v3550_v56 }
  0x73   :  { %1482 = vmatpush.bf16.msra.mxu3 %v3659_v28  ;;  %v3739_v20 = vor.u32 %v4681_v10, %v3736_v11  ;;  %v4644_v28 = vld [vmem:[#allocation7 + $0x3d4] sm:$0xf0]  ;;  %v3455_v32 = vor.u32 %v4612_v25, %v3454_v24  ;;  %v3150_v63 = vld [vmem:[#allocation7 + $0x68] sm:$0xf]  ;;  %v4550_v56 = vld [vmem:[#allocation7 + $0xec] sm:$0xf] }
  0x74   :  { %1495 = vmatpush.bf16.msrb.mxu2 %v3803_v22  ;;  %v4548_v22 = vld [vmem:[#allocation7 + $0xd4] sm:$0xf0]  ;;  %v3406_v2 = vld [vmem:[#allocation7 + $0x268] sm:$0xf]  ;;  %v3216_v57 = vld [vmem:[#allocation7 + $0xf8] sm:$0xf0] }
  0x75   :  { %1455 = vmatpush.bf16.msra.mxu0 %v3387_v35  ;;  %v3199_v29 = vor.u32 %v4548_v22, %v3198_v21  ;;  %v3583_v35 = vor.u32 %v4644_v28, %v3582_v27  ;;  %v4536_v0 = vld [vmem:[#allocation7 + $0x74] sm:$0xf0]  ;;  %v3534_v5 = vld [vmem:[#allocation7 + $0x368] sm:$0xf] }
  0x76   :  { %1469 = vmatpush.bf16.msra.mxu1 %v3515_v36  ;;  %v3438_v36 = vld [vmem:[#allocation7 + $0x2a8] sm:$0xf]  ;;  %v4632_v6 = vld [vmem:[#allocation7 + $0x374] sm:$0xf0] }
  0x77   :  { %1483 = vmatpush.bf16.msra.mxu3 %v3643_v41  ;;  %v4640_v41 = vld [vmem:[#allocation7 + $0x3b4] sm:$0xf0]  ;;  %v3439_v46 = vor.u32 %v4608_v38, %v3438_v36  ;;  %v3535_v14 = vor.u32 %v4632_v6, %v3534_v5  ;;  %v3390_v15 = vld [vmem:[#allocation7 + $0x248] sm:$0xf]  ;;  %v3219_v6 = vor.u32 %v4550_v56, %v3216_v57 }
  0x78   :  { %1496 = vmatpush.bf16.msrb.mxu2 %v3787_v34  ;;  %v4544_v34 = vld [vmem:[#allocation7 + $0xb4] sm:$0xf0]  ;;  %v3567_v49 = vor.u32 %v4640_v41, %v3566_v40  ;;  %v3518_v18 = vld [vmem:[#allocation7 + $0x348] sm:$0xf] }
  0x79   :  { %1456 = vmatpush.bf16.msra.mxu0 %v3371_v52  ;;  %v3183_v43 = vor.u32 %v4544_v34, %v3182_v33  ;;  %v4604_v52 = vld [vmem:[#allocation7 + $0x294] sm:$0xf0]  ;;  %v3262_v21 = vld [vmem:[#allocation7 + $0x148] sm:$0xf] }
  0x7a   :  { %1470 = vmatpush.bf16.msra.mxu1 %v3499_v53  ;;  %v3311_v53 = vor.u32 %v4576_v45, %v3310_v44  ;;  %v3423_v62 = vor.u32 %v4604_v52, %v3422_v51  ;;  %v4568_v10 = vld [vmem:[#allocation7 + $0x174] sm:$0xf0]  ;;  %v3118_v24 = vld [vmem:[#allocation7 + $0x28] sm:$0xf] }
  0x7b   :  { %1484 = vmatpush.bf16.msra.mxu3 %v3627_v59  ;;  %v3294_v59 = vld [vmem:[#allocation7 + $0x188] sm:$0xf]  ;;  %v4564_v22 = vld [vmem:[#allocation7 + $0x154] sm:$0xf0] }
  0x7c   :  { %1497 = vmatpush.bf16.msrb.mxu2 %v3771_v48  ;;  %v4540_v48 = vld [vmem:[#allocation7 + $0x94] sm:$0xf0]  ;;  %v3295_v4 = vor.u32 %v4572_v61, %v3294_v59  ;;  %v3374_v27 = vld [vmem:[#allocation7 + $0x228] sm:$0xf] }
  0x7d   :  { %1457 = vmatpush.bf16.msra.mxu0 %v3355_v7  ;;  %v3167_v58 = vor.u32 %v4540_v48, %v3166_v47  ;;  %v3151_v7 = vor.u32 %v4536_v0, %v3150_v63  ;;  %v4528_v25 = vld [vmem:[#allocation7 + $0x34] sm:$0xf0]  ;;  %v3502_v30 = vld [vmem:[#allocation7 + $0x328] sm:$0xf] }
  0x7e   :  { %1471 = vmatpush.bf16.msra.mxu1 %v3483_v9  ;;  %v3278_v9 = vld [vmem:[#allocation7 + $0x168] sm:$0xf]  ;;  %v4592_v28 = vld [vmem:[#allocation7 + $0x234] sm:$0xf0] }
  0x7f   :  { %1485 = vmatpush.bf16.msra.mxu3 %v3611_v12  ;;  %v3134_v12 = vld [vmem:[#allocation7 + $0x48] sm:$0xf]  ;;  %v3279_v17 = vor.u32 %v4568_v10, %v3278_v9  ;;  %v4624_v31 = vld [vmem:[#allocation7 + $0x334] sm:$0xf0]  ;;  %v3375_v36 = vor.u32 %v4592_v28, %v3374_v27  ;;  %v4546_v9 = vld [vmem:[#allocation7 + $0xcc] sm:$0xf] }
  0x80   :  { %1498 = vmatpush.bf16.msrb.mxu2 %v3755_v3  ;;  %1458 = vmatmul.bf16.vlgmr.msra.gmra.mxu0 %v5137_v54  ;;  %v4600_v3 = vld [vmem:[#allocation7 + $0x274] sm:$0xf0]  ;;  %v3246_v33 = vld [vmem:[#allocation7 + $0x128] sm:$0xf]  ;;  %v3503_v41 = vor.u32 %v4624_v31, %v3502_v30  ;;  %v3200_v10 = vld [vmem:[#allocation7 + $0xd8] sm:$0xf0] }
  0x81   :  { %1548 = vmatpush.bf16.msrb.mxu0 %v3471_v19  ;;  %1472 = vmatmul.bf16.vlgmr.msra.gmra.mxu1 %v5141_v60  ;;  %v3407_v11 = vor.u32 %v4600_v3, %v3406_v2  ;;  %v4628_v19 = vld [vmem:[#allocation7 + $0x354] sm:$0xf0]  ;;  %v3358_v44 = vld [vmem:[#allocation7 + $0x208] sm:$0xf]  ;;  %v4582_v3 = vld [vmem:[#allocation7 + $0x1ec] sm:$0xf] }
  0x82   :  { %1520 = vmatpush.bf16.msrb.mxu1 %v3215_v13  ;;  %1486 = vmatmul.bf16.vlgmr.msra.gmra.mxu3 %v5153_v37  ;;  %v4532_v13 = vld [vmem:[#allocation7 + $0x54] sm:$0xf0]  ;;  %v3854_v61 = vld [vmem:[#allocation7 + $0x5e8] sm:$0xf]  ;;  %v3312_v30 = vld [vmem:[#allocation7 + $0x1b8] sm:$0xf0] }
  0x83   :  { %1513 = vmatpush.bf16.msrb.mxu3 %v3867_v16  ;;  %v4596_v16 = vld [vmem:[#allocation7 + $0x254] sm:$0xf0]  ;;  %v3710_v63 = vld [vmem:[#allocation7 + $0x4c8] sm:$0xf] }
  0x84   :  { %1499 = vmatpush.bf16.msrb.mxu2 %v3739_v20  ;;  %v3135_v20 = vor.u32 %v4532_v13, %v3134_v12  ;;  %v4560_v34 = vld [vmem:[#allocation7 + $0x134] sm:$0xf0]  ;;  %v3838_v13 = vld [vmem:[#allocation7 + $0x5c8] sm:$0xf] }
  0x85   :  { %1549 = vmatpush.bf16.msrb.mxu0 %v3455_v32  ;;  %v3119_v32 = vor.u32 %v4528_v25, %v3118_v24  ;;  %v4524_v38 = vld [vmem:[#allocation7 + $0x14] sm:$0xf0]  ;;  %v3247_v47 = vor.u32 %v4560_v34, %v3246_v33  ;;  %v3822_v25 = vld [vmem:[#allocation7 + $0x5a8] sm:$0xf]  ;;  %v4538_v33 = vld [vmem:[#allocation7 + $0x8c] sm:$0xf] }
  0x86   :  { %1521 = vmatpush.bf16.msrb.mxu1 %v3199_v29  ;;  %v3263_v29 = vor.u32 %v4564_v22, %v3262_v21  ;;  %v4680_v40 = vld [vmem:[#allocation7 + $0x4f4] sm:$0xf0]  ;;  %v4542_v21 = vld [vmem:[#allocation7 + $0xac] sm:$0xf]  ;;  %v3184_v22 = vld [vmem:[#allocation7 + $0xb8] sm:$0xf0] }
  0x87   :  { %1534 = vmatpush.bf16.msra.mxu3 %v3343_v26  ;;  %1500 = vmatmul.bf16.vlgmr.msrb.gmra.mxu2 %v5155_v42  ;;  %v3519_v26 = vor.u32 %v4628_v19, %v3518_v18  ;;  %v4588_v45 = vld [vmem:[#allocation7 + $0x214] sm:$0xf0]  ;;  %v3328_v18 = vld [vmem:[#allocation7 + $0x1d8] sm:$0xf0]  ;;  %v3203_v19 = vor.u32 %v4546_v9, %v3200_v10  ;;  %v3678_v27 = vld [vmem:[#allocation7 + $0x488] sm:$0xf]  ;;  %v3187_v31 = vor.u32 %v4542_v21, %v3184_v22 }
  0x88   :  { %1562 = vmatpush.bf16.msra.mxu2 %v3599_v23  ;;  %v3391_v23 = vor.u32 %v4596_v16, %v3390_v15  ;;  %v4620_v48 = vld [vmem:[#allocation7 + $0x314] sm:$0xf0]  ;;  %v3359_v59 = vor.u32 %v4588_v45, %v3358_v44  ;;  %v3694_v15 = vld [vmem:[#allocation7 + $0x4a8] sm:$0xf]  ;;  %v3168_v34 = vld [vmem:[#allocation7 + $0x98] sm:$0xf0] }
  0x89   :  { %1550 = vmatpush.bf16.msrb.mxu0 %v3439_v46  ;;  %v3486_v46 = vld [vmem:[#allocation7 + $0x308] sm:$0xf]  ;;  %v4716_v51 = vld [vmem:[#allocation7 + $0x614] sm:$0xf0]  ;;  %v3296_v44 = vld [vmem:[#allocation7 + $0x198] sm:$0xf0]  ;;  %v3171_v45 = vor.u32 %v4538_v33, %v3168_v34 }
  0x8a   :  { %1522 = vmatpush.bf16.msrb.mxu1 %v3183_v43  ;;  %v3230_v43 = vld [vmem:[#allocation7 + $0x108] sm:$0xf]  ;;  %v3487_v0 = vor.u32 %v4620_v48, %v3486_v46  ;;  %v4672_v16 = vld [vmem:[#allocation7 + $0x4b4] sm:$0xf0]  ;;  %v3152_v48 = vld [vmem:[#allocation7 + $0x78] sm:$0xf0] }
  0x8b   :  { %1535 = vmatpush.bf16.msra.mxu3 %v3327_v39  ;;  %v3726_v39 = vld [vmem:[#allocation7 + $0x4e8] sm:$0xf]  ;;  %v4668_v28 = vld [vmem:[#allocation7 + $0x494] sm:$0xf0]  ;;  %v3264_v9 = vld [vmem:[#allocation7 + $0x158] sm:$0xf0] }
  0x8c   :  { %1563 = vmatpush.bf16.msra.mxu2 %v3583_v35  ;;  %v3102_v35 = vld [vmem:[#allocation7 + $0x8] sm:$0xf]  ;;  %v4660_v57 = vld [vmem:[#allocation7 + $0x454] sm:$0xf0]  ;;  %v3248_v21 = vld [vmem:[#allocation7 + $0x138] sm:$0xf0] }
  0x8d   :  { %1551 = vmatpush.bf16.msrb.mxu0 %v3423_v62  ;;  %v3103_v52 = vor.u32 %v4524_v38, %v3102_v35  ;;  %v4712_v62 = vld [vmem:[#allocation7 + $0x5f4] sm:$0xf0]  ;;  %v3679_v35 = vor.u32 %v4668_v28, %v3678_v27  ;;  %v3806_v38 = vld [vmem:[#allocation7 + $0x588] sm:$0xf]  ;;  %v4522_v27 = vld [vmem:[#allocation7 + $0xc] sm:$0xf] }
  0x8e   :  { %1523 = vmatpush.bf16.msrb.mxu1 %v3167_v58  ;;  %v3727_v58 = vor.u32 %v4680_v40, %v3726_v39  ;;  %v4700_v39 = vld [vmem:[#allocation7 + $0x594] sm:$0xf0]  ;;  %v3662_v40 = vld [vmem:[#allocation7 + $0x468] sm:$0xf]  ;;  %v3104_v28 = vld [vmem:[#allocation7 + $0x18] sm:$0xf0] }
  0x8f   :  { %1536 = vmatpush.bf16.msra.mxu3 %v3311_v53  ;;  %v4556_v53 = vld [vmem:[#allocation7 + $0x114] sm:$0xf0]  ;;  %v3807_v46 = vor.u32 %v4700_v39, %v3806_v38  ;;  %v3646_v56 = vld [vmem:[#allocation7 + $0x448] sm:$0xf]  ;;  %v3600_v33 = vld [vmem:[#allocation7 + $0x3f8] sm:$0xf0]  ;;  %v3107_v39 = vor.u32 %v4522_v27, %v3104_v28 }
  0x90   :  { %1564 = vmatpush.bf16.msra.mxu2 %v3567_v49  ;;  %v3870_v49 = vld [vmem:[#allocation7 + $0x608] sm:$0xf]  ;;  %v3231_v5 = vor.u32 %v4556_v53, %v3230_v43  ;;  %v4570_v43 = vld [vmem:[#allocation7 + $0x18c] sm:$0xf]  ;;  %v4696_v53 = vld [vmem:[#allocation7 + $0x574] sm:$0xf0] }
  0x91   :  { %1552 = vmatpush.bf16.msrb.mxu0 %v3407_v11  ;;  %v3871_v2 = vor.u32 %v4716_v51, %v3870_v49  ;;  %v3299_v51 = vor.u32 %v4570_v43, %v3296_v44  ;;  %v4610_v38 = vld [vmem:[#allocation7 + $0x2cc] sm:$0xf]  ;;  %v3232_v43 = vld [vmem:[#allocation7 + $0x118] sm:$0xf0] }
  0x92   :  { %1524 = vmatpush.bf16.msrb.mxu1 %v3151_v7  ;;  %3877 = vmatmul.msk.bf16.vlgmr.msrb.gmra.mxu3 %vm1320_vm0, %v5149_v50  ;;  %v3855_v7 = vor.u32 %v4712_v62, %v3854_v61  ;;  %v3536_v28 = vld [vmem:[#allocation7 + $0x378] sm:$0xf0] }
  0x93   :  { %1537 = vmatpush.bf16.msra.mxu3 %v3295_v4  ;;  %v3344_v4 = vld [vmem:[#allocation7 + $0x1f8] sm:$0xf0] }
  0x94   :  { %1565 = vmatpush.bf16.msra.mxu2 %v3551_v1  ;;  %v4676_v1 = vld [vmem:[#allocation7 + $0x4d4] sm:$0xf0]  ;;  %v3347_v12 = vor.u32 %v4582_v3, %v3344_v4  ;;  %v3774_v3 = vld [vmem:[#allocation7 + $0x548] sm:$0xf] }
  0x95   :  { %1553 = vmatpush.bf16.msrb.mxu0 %v3391_v23  ;;  %v3711_v11 = vor.u32 %v4676_v1, %v3710_v63  ;;  %v3695_v23 = vor.u32 %v4672_v16, %v3694_v15  ;;  %v4530_v63 = vld [vmem:[#allocation7 + $0x4c] sm:$0xf]  ;;  %v3647_v1 = vor.u32 %v4660_v57, %v3646_v56  ;;  %v4692_v4 = vld [vmem:[#allocation7 + $0x554] sm:$0xf0]  ;;  %v3758_v16 = vld [vmem:[#allocation7 + $0x528] sm:$0xf] }
  0x96   :  { %1525 = vmatpush.bf16.msrb.mxu1 %v3135_v20  ;;  %v4674_v56 = vld [vmem:[#allocation7 + $0x4cc] sm:$0xf]  ;;  %v3712_v57 = vld [vmem:[#allocation7 + $0x4d8] sm:$0xf0] }
  0x97   :  { %1538 = vmatpush.bf16.msra.mxu3 %v3279_v17  ;;  %v4578_v17 = vld [vmem:[#allocation7 + $0x1cc] sm:$0xf] }
  0x98   :  { %1566 = vmatpush.bf16.msra.mxu2 %v3535_v14  ;;  %v4708_v14 = vld [vmem:[#allocation7 + $0x5d4] sm:$0xf0]  ;;  %v3331_v24 = vor.u32 %v4578_v17, %v3328_v18  ;;  %v3614_v18 = vld [vmem:[#allocation7 + $0x408] sm:$0xf] }
  0x99   :  { %1554 = vmatpush.bf16.msrb.mxu0 %v3375_v36  ;;  %v3839_v20 = vor.u32 %v4708_v14, %v3838_v13  ;;  %v3120_v13 = vld [vmem:[#allocation7 + $0x38] sm:$0xf0]  ;;  %v4688_v17 = vld [vmem:[#allocation7 + $0x534] sm:$0xf0] }
  0x9a   :  { %1526 = vmatpush.bf16.msrb.mxu1 %v3119_v32 }
  0x9b   :  { %1539 = vmatpush.bf16.msra.mxu3 %v3263_v29  ;;  %v4574_v29 = vld [vmem:[#allocation7 + $0x1ac] sm:$0xf] }
  0x9c   :  { %1567 = vmatpush.bf16.msra.mxu2 %v3519_v26  ;;  %v4704_v26 = vld [vmem:[#allocation7 + $0x5b4] sm:$0xf0]  ;;  %v3315_v36 = vor.u32 %v4574_v29, %v3312_v30 }
  0x9d   :  { %1555 = vmatpush.bf16.msrb.mxu0 %v3359_v59  ;;  %v3823_v32 = vor.u32 %v4704_v26, %v3822_v25  ;;  %v3280_v59 = vld [vmem:[#allocation7 + $0x178] sm:$0xf0]  ;;  %v3759_v25 = vor.u32 %v4688_v17, %v3758_v16  ;;  %v3742_v26 = vld [vmem:[#allocation7 + $0x508] sm:$0xf] }
  0x9e   :  { %1527 = vmatpush.bf16.msrb.mxu1 %v3103_v52  ;;  %v3790_v52 = vld [vmem:[#allocation7 + $0x568] sm:$0xf]  ;;  %v3552_v17 = vld [vmem:[#allocation7 + $0x398] sm:$0xf0] }
  0x9f   :  { %1540 = vmatpush.bf16.msra.mxu3 %v3247_v47  ;;  %v4534_v47 = vld [vmem:[#allocation7 + $0x6c] sm:$0xf]  ;;  %v3791_v62 = vor.u32 %v4696_v53, %v3790_v52  ;;  %v3584_v53 = vld [vmem:[#allocation7 + $0x3d8] sm:$0xf0] }
  0xa0   :  { %1568 = vmatpush.bf16.msra.mxu2 %v3503_v41  ;;  %1556 = vmatmul.bf16.vlgmr.msrb.gmra.mxu0 %v5137_v54  ;;  %v4664_v41 = vld [vmem:[#allocation7 + $0x474] sm:$0xf0]  ;;  %v3155_v61 = vor.u32 %v4534_v47, %v3152_v48 }
  0xa1   :  { %1611 = vmatpush.bf16.msra.mxu0 %v3871_v2  ;;  %1528 = vmatmul.bf16.vlgmr.msrb.gmra.mxu1 %v5139_v55  ;;  %v3663_v49 = vor.u32 %v4664_v41, %v3662_v40  ;;  %v3456_v40 = vld [vmem:[#allocation7 + $0x2d8] sm:$0xf0]  ;;  %v4554_v41 = vld [vmem:[#allocation7 + $0x10c] sm:$0xf] }
  0xa2   :  { %1576 = vmatpush.bf16.msra.mxu1 %v3727_v58  ;;  %v4566_v58 = vld [vmem:[#allocation7 + $0x16c] sm:$0xf]  ;;  %v3235_v52 = vor.u32 %v4554_v41, %v3232_v43  ;;  %v3648_v43 = vld [vmem:[#allocation7 + $0x458] sm:$0xf0] }
  0xa3   :  { %1541 = vmatpush.bf16.msra.mxu3 %v3231_v5  ;;  %v3283_v2 = vor.u32 %v4566_v58, %v3280_v59  ;;  %v3630_v5 = vld [vmem:[#allocation7 + $0x428] sm:$0xf]  ;;  %v4606_v59 = vld [vmem:[#allocation7 + $0x2ac] sm:$0xf] }
  0xa4   :  { %1569 = vmatpush.bf16.msra.mxu2 %v3487_v0  ;;  %v3136_v0 = vld [vmem:[#allocation7 + $0x58] sm:$0xf0]  ;;  %v4658_v41 = vld [vmem:[#allocation7 + $0x44c] sm:$0xf] }
  0xa5   :  { %1632 = vmatpush.bf16.msrb.mxu0 %v3347_v12  ;;  %v3139_v10 = vor.u32 %v4530_v63, %v3136_v0  ;;  %v4526_v12 = vld [vmem:[#allocation7 + $0x2c] sm:$0xf]  ;;  %v3840_v63 = vld [vmem:[#allocation7 + $0x5d8] sm:$0xf0] }
  0xa6   :  { %1577 = vmatpush.bf16.msra.mxu1 %v3711_v11  ;;  %1542 = vmatmul.bf16.vlgmr.msra.gmra.mxu3 %v5145_v8  ;;  %v3775_v11 = vor.u32 %v4692_v4, %v3774_v3  ;;  %v3123_v22 = vor.u32 %v4526_v12, %v3120_v13  ;;  %v3568_v4 = vld [vmem:[#allocation7 + $0x3b8] sm:$0xf0] }
  0xa7   :  { %1590 = vmatpush.bf16.msrb.mxu3 %v3855_v7  ;;  %1570 = vmatmul.bf16.vlgmr.msra.gmra.mxu2 %v5141_v60  ;;  %v4562_v7 = vld [vmem:[#allocation7 + $0x14c] sm:$0xf]  ;;  %v3824_v12 = vld [vmem:[#allocation7 + $0x5b8] sm:$0xf0] }
  0xa8   :  { %1618 = vmatpush.bf16.msrb.mxu2 %v3219_v6  ;;  %v4656_v6 = vld [vmem:[#allocation7 + $0x434] sm:$0xf0]  ;;  %v3267_v15 = vor.u32 %v4562_v7, %v3264_v9  ;;  %v4602_v9 = vld [vmem:[#allocation7 + $0x28c] sm:$0xf] }
  0xa9   :  { %1633 = vmatpush.bf16.msrb.mxu0 %v3331_v24  ;;  %v3631_v14 = vor.u32 %v4656_v6, %v3630_v5  ;;  %v3472_v24 = vld [vmem:[#allocation7 + $0x2f8] sm:$0xf0]  ;;  %v4670_v5 = vld [vmem:[#allocation7 + $0x4ac] sm:$0xf] }
  0xaa   :  { %1578 = vmatpush.bf16.msra.mxu1 %v3695_v23  ;;  %v4614_v23 = vld [vmem:[#allocation7 + $0x2ec] sm:$0xf]  ;;  %v3696_v6 = vld [vmem:[#allocation7 + $0x4b8] sm:$0xf0] }
  0xab   :  { %1591 = vmatpush.bf16.msrb.mxu3 %v3839_v20  ;;  %v4558_v20 = vld [vmem:[#allocation7 + $0x12c] sm:$0xf]  ;;  %v3475_v34 = vor.u32 %v4614_v23, %v3472_v24 }
  0xac   :  { %1619 = vmatpush.bf16.msrb.mxu2 %v3203_v19  ;;  %v4652_v19 = vld [vmem:[#allocation7 + $0x414] sm:$0xf0]  ;;  %v3251_v30 = vor.u32 %v4558_v20, %v3248_v21  ;;  %v4598_v21 = vld [vmem:[#allocation7 + $0x26c] sm:$0xf] }
  0xad   :  { %1634 = vmatpush.bf16.msrb.mxu0 %v3315_v36  ;;  %v3615_v29 = vor.u32 %v4652_v19, %v3614_v18  ;;  %v3728_v36 = vld [vmem:[#allocation7 + $0x4f8] sm:$0xf0]  ;;  %v4666_v18 = vld [vmem:[#allocation7 + $0x48c] sm:$0xf] }
  0xae   :  { %1579 = vmatpush.bf16.msra.mxu1 %v3679_v35  ;;  %v4678_v35 = vld [vmem:[#allocation7 + $0x4ec] sm:$0xf]  ;;  %v3680_v19 = vld [vmem:[#allocation7 + $0x498] sm:$0xf0] }
  0xaf   :  { %1592 = vmatpush.bf16.msrb.mxu3 %v3823_v32  ;;  %v4646_v32 = vld [vmem:[#allocation7 + $0x3ec] sm:$0xf]  ;;  %v3731_v48 = vor.u32 %v4678_v35, %v3728_v36 }
  0xb0   :  { %1620 = vmatpush.bf16.msrb.mxu2 %v3187_v31  ;;  %3878 = vmatmul.msk.bf16.vlgmr.msra.gmra.mxu0 %vm1320_vm0, %v5149_v50  ;;  %v4684_v31 = vld [vmem:[#allocation7 + $0x514] sm:$0xf0]  ;;  %v3603_v47 = vor.u32 %v4646_v32, %v3600_v33  ;;  %v4698_v23 = vld [vmem:[#allocation7 + $0x58c] sm:$0xf] }
  0xb1   :  { %1635 = vmatpush.bf16.msrb.mxu0 %v3299_v51  ;;  %v3743_v44 = vor.u32 %v4684_v31, %v3742_v26  ;;  %v3459_v51 = vor.u32 %v4610_v38, %v3456_v40  ;;  %v4630_v26 = vld [vmem:[#allocation7 + $0x36c] sm:$0xf]  ;;  %v3520_v40 = vld [vmem:[#allocation7 + $0x358] sm:$0xf0] }
  0xb2   :  { %1580 = vmatpush.bf16.msra.mxu1 %v3663_v49  ;;  %v4642_v49 = vld [vmem:[#allocation7 + $0x3cc] sm:$0xf]  ;;  %v3539_v35 = vor.u32 %v4630_v26, %v3536_v28  ;;  %v4743_v28 = vld [vmem:[#allocation10 + $0xcc] sm:$0xf0] }
  0xb3   :  { %1593 = vmatpush.bf16.msrb.mxu3 %v3807_v46  ;;  %v3856_v46 = vld [vmem:[#allocation7 + $0x5f8] sm:$0xf0]  ;;  %v3587_v0 = vor.u32 %v4642_v49, %v3584_v53  ;;  %v4594_v32 = vld [vmem:[#allocation7 + $0x24c] sm:$0xf] }
  0xb4   :  { %1621 = vmatpush.bf16.msrb.mxu2 %v3171_v45  ;;  %v4710_v45 = vld [vmem:[#allocation7 + $0x5ec] sm:$0xf] }
  0xb5   :  { %1636 = vmatpush.bf16.msrb.mxu0 %v3283_v2  ;;  %v3859_v58 = vor.u32 %v4710_v45, %v3856_v46  ;;  %v4638_v2 = vld [vmem:[#allocation7 + $0x3ac] sm:$0xf]  ;;  %v3376_v46 = vld [vmem:[#allocation7 + $0x238] sm:$0xf0] }
  0xb6   :  { %1581 = vmatpush.bf16.msra.mxu1 %v3647_v1  ;;  %v3715_v1 = vor.u32 %v4674_v56, %v3712_v57  ;;  %v3571_v13 = vor.u32 %v4638_v2, %v3568_v4  ;;  %v4694_v33 = vld [vmem:[#allocation7 + $0x56c] sm:$0xf]  ;;  %v3504_v57 = vld [vmem:[#allocation7 + $0x338] sm:$0xf0] }
  0xb7   :  { %1594 = vmatpush.bf16.msrb.mxu3 %v3791_v62  ;;  %v4706_v62 = vld [vmem:[#allocation7 + $0x5cc] sm:$0xf]  ;;  %v3760_v2 = vld [vmem:[#allocation7 + $0x538] sm:$0xf0] }
  0xb8   :  { %1622 = vmatpush.bf16.msrb.mxu2 %v3155_v61  ;;  %v3440_v61 = vld [vmem:[#allocation7 + $0x2b8] sm:$0xf0]  ;;  %v3843_v7 = vor.u32 %v4706_v62, %v3840_v63  ;;  %v4626_v38 = vld [vmem:[#allocation7 + $0x34c] sm:$0xf] }
  0xb9   :  { %1637 = vmatpush.bf16.msrb.mxu0 %v3267_v15  ;;  %v3443_v3 = vor.u32 %v4606_v59, %v3440_v61  ;;  %v4634_v15 = vld [vmem:[#allocation7 + $0x38c] sm:$0xf]  ;;  %v3523_v49 = vor.u32 %v4626_v38, %v3520_v40  ;;  %v3632_v59 = vld [vmem:[#allocation7 + $0x438] sm:$0xf0]  ;;  %v3962_v38 = vld [vmem:[#allocation10 + $0xa0] sm:$0xf] }
  0xba   :  { %1582 = vmatpush.bf16.msra.mxu1 %v3631_v14  ;;  %v3699_v14 = vor.u32 %v4670_v5, %v3696_v6  ;;  %v3555_v24 = vor.u32 %v4634_v15, %v3552_v17  ;;  %v4590_v45 = vld [vmem:[#allocation7 + $0x22c] sm:$0xf]  ;;  %v3872_v4 = vld [vmem:[#allocation7 + $0x618] sm:$0xf0]  ;;  %v4747_v17 = vld [vmem:[#allocation10 + $0xec] sm:$0xf0] }
  0xbb   :  { %1595 = vmatpush.bf16.msrb.mxu3 %v3775_v11  ;;  %v4702_v11 = vld [vmem:[#allocation7 + $0x5ac] sm:$0xf]  ;;  %v3379_v56 = vor.u32 %v4590_v45, %v3376_v46 }
  0xbc   :  { %1623 = vmatpush.bf16.msrb.mxu2 %v3139_v10  ;;  %v3424_v10 = vld [vmem:[#allocation7 + $0x298] sm:$0xf0]  ;;  %v3827_v20 = vor.u32 %v4702_v11, %v3824_v12  ;;  %v4586_v63 = vld [vmem:[#allocation7 + $0x20c] sm:$0xf] }
  0xbd   :  { %1638 = vmatpush.bf16.msrb.mxu0 %v3251_v30  ;;  %v3427_v16 = vor.u32 %v4602_v9, %v3424_v10  ;;  %v3664_v30 = vld [vmem:[#allocation7 + $0x478] sm:$0xf0]  ;;  %v5179_v9 = vld [vmem:[#allocation9] sm:$0xf] }
  0xbe   :  { %1583 = vmatpush.bf16.msra.mxu1 %v3615_v29  ;;  %v4662_v29 = vld [vmem:[#allocation7 + $0x46c] sm:$0xf]  ;;  %v3488_v12 = vld [vmem:[#allocation7 + $0x318] sm:$0xf0] }
  0xbf   :  { %1596 = vmatpush.bf16.msrb.mxu3 %v3759_v25  ;;  %v3683_v25 = vor.u32 %v4666_v18, %v3680_v19  ;;  %v3667_v36 = vor.u32 %v4662_v29, %v3664_v30  ;;  %v4682_v18 = vld [vmem:[#allocation7 + $0x50c] sm:$0xf] }
  0xc0   :  { %1624 = vmatpush.bf16.msrb.mxu2 %v3123_v22  ;;  %v3408_v22 = vld [vmem:[#allocation7 + $0x278] sm:$0xf0]  ;;  %v1333_v53 = vpop.f32.mrf.mxu0 }
  0xc1   :  { %1584 = vmatmul.bf16.vlgmr.msra.gmra.mxu1 %v5153_v37  ;;  %1639 = vmatpush.bf16.msrb.mxu0 %v3235_v52  ;;  %v3411_v27 = vor.u32 %v4598_v21, %v3408_v22  ;;  %v4622_v52 = vld [vmem:[#allocation7 + $0x32c] sm:$0xf]  ;;  %v4122_v21 = vld [vmem:[#allocation10 + $0x1e0] sm:$0xf]  ;;  %v4779_v22 = vld [vmem:[#allocation10 + $0x1ec] sm:$0xf0] }
  0xc2   :  { %1646 = vmatpush.bf16.msrb.mxu1 %v3475_v34  ;;  %v3792_v34 = vld [vmem:[#allocation7 + $0x578] sm:$0xf0]  ;;  %v3507_v5 = vor.u32 %v4622_v52, %v3504_v57  ;;  %v4123_v29 = vor.u32 %v4779_v22, %v4122_v21  ;;  %v4074_v52 = vld [vmem:[#allocation10 + $0x180] sm:$0xf]  ;;  %v4755_v21 = vld [vmem:[#allocation10 + $0x12c] sm:$0xf0] }
  0xc3   :  { %1597 = vmatpush.bf16.msrb.mxu3 %v3743_v44  ;;  %v3795_v44 = vor.u32 %v4694_v33, %v3792_v34 }
  0xc4   :  { %1625 = vmatpush.bf16.msrb.mxu2 %v3107_v39  ;;  %1640 = vmatmul.bf16.vlgmr.msrb.gmra.mxu0 %v5145_v8  ;;  %v3392_v8 = vld [vmem:[#allocation7 + $0x258] sm:$0xf0]  ;;  %v5177_v61 = vpop.f32.mrf.mxu1 }
  0xc5   :  { %1688 = vmatpush.bf16.msra.mxu0 %v3859_v58  ;;  %v3395_v39 = vor.u32 %v4594_v32, %v3392_v8  ;;  %v4654_v58 = vld [vmem:[#allocation7 + $0x42c] sm:$0xf]  ;;  %v5181_v10 = vpop.f32.mrf.mxu2  ;;  %v4775_v32 = vld [vmem:[#allocation10 + $0x1cc] sm:$0xf0] }
  0xc6   :  { %1647 = vmatpush.bf16.msrb.mxu1 %v3459_v51  ;;  %1598 = vmatmul.bf16.vlgmr.msrb.gmra.mxu3 %v5155_v42  ;;  %v3651_v51 = vor.u32 %v4658_v41, %v3648_v43  ;;  %v3635_v6 = vor.u32 %v4654_v58, %v3632_v59  ;;  %v4090_v43 = vld [vmem:[#allocation10 + $0x1a0] sm:$0xf]  ;;  %v4731_v59 = vld [vmem:[#allocation10 + $0x6c] sm:$0xf0] }
  0xc7   :  { %1660 = vmatpush.bf16.msra.mxu3 %v3603_v47  ;;  %1626 = vmatmul.bf16.vlgmr.msrb.gmra.mxu2 %v5139_v55  ;;  %v3808_v55 = vld [vmem:[#allocation7 + $0x598] sm:$0xf0]  ;;  %v4690_v47 = vld [vmem:[#allocation7 + $0x54c] sm:$0xf]  ;;  %v1375_v33 = vpop.f32.mrf.mxu3  ;;  %v3930_v58 = vld [vmem:[#allocation10 + $0x60] sm:$0xf] }
  0xc8   :  { %1674 = vmatpush.bf16.msra.mxu2 %v3731_v48  ;;  %v3811_v31 = vor.u32 %v4698_v23, %v3808_v55  ;;  %v3776_v48 = vld [vmem:[#allocation7 + $0x558] sm:$0xf0]  ;;  %v1335_v30 = vpop.f32.mrf.mxu0 }
  0xc9   :  { %1689 = vmatpush.bf16.msra.mxu0 %v3843_v7  ;;  %v3779_v62 = vor.u32 %v4690_v47, %v3776_v48  ;;  %v4618_v7 = vld [vmem:[#allocation7 + $0x30c] sm:$0xf]  ;;  %v3946_v47 = vld [vmem:[#allocation10 + $0x80] sm:$0xf]  ;;  %v4735_v48 = vld [vmem:[#allocation10 + $0x8c] sm:$0xf0] }
  0xca   :  { %1648 = vmatpush.bf16.msrb.mxu1 %v3443_v3  ;;  %v4714_v3 = vld [vmem:[#allocation7 + $0x60c] sm:$0xf]  ;;  %v3491_v23 = vor.u32 %v4618_v7, %v3488_v12 }
  0xcb   :  { %1661 = vmatpush.bf16.msra.mxu3 %v3587_v0  ;;  %v3360_v0 = vld [vmem:[#allocation7 + $0x218] sm:$0xf0]  ;;  %v3875_v19 = vor.u32 %v4714_v3, %v3872_v4  ;;  %v3914_v4 = vld [vmem:[#allocation10 + $0x40] sm:$0xf] }
  0xcc   :  { %1675 = vmatpush.bf16.msra.mxu2 %v3715_v1  ;;  %v4686_v1 = vld [vmem:[#allocation7 + $0x52c] sm:$0xf]  ;;  %v3363_v11 = vor.u32 %v4586_v63, %v3360_v0  ;;  %v1349_v8 = vpop.f32.mrf.mxu1  ;;  %v4058_v63 = vld [vmem:[#allocation10 + $0x160] sm:$0xf]  ;;  %v4763_v0 = vld [vmem:[#allocation10 + $0x16c] sm:$0xf0] }
  0xcd   :  { %1690 = vmatpush.bf16.msra.mxu0 %v3827_v20  ;;  %v3763_v15 = vor.u32 %v4686_v1, %v3760_v2  ;;  %v3744_v20 = vld [vmem:[#allocation7 + $0x518] sm:$0xf0]  ;;  %v1363_v41 = vpop.f32.mrf.mxu2  ;;  %v3931_v1 = vor.u32 %v4731_v59, %v3930_v58  ;;  %v4807_v58 = vld [vmem:[#allocation10 + $0x2cc] sm:$0xf0]  ;;  %v4733_v59 = vld [vmem:[#allocation10 + $0x84] sm:$0xf] }
  0xce   :  { %1649 = vmatpush.bf16.msrb.mxu1 %v3427_v16  ;;  %v3994_v16 = vld [vmem:[#allocation10 + $0xe0] sm:$0xf]  ;;  %v3747_v26 = vor.u32 %v4682_v18, %v3744_v20  ;;  %v4723_v18 = vld [vmem:[#allocation10 + $0x2c] sm:$0xf0] }
  0xcf   :  { %1662 = vmatpush.bf16.msra.mxu3 %v3571_v13  ;;  %v4650_v13 = vld [vmem:[#allocation7 + $0x40c] sm:$0xf]  ;;  %v4026_v20 = vld [vmem:[#allocation10 + $0x120] sm:$0xf] }
  0xd0   :  { %1676 = vmatpush.bf16.msra.mxu2 %v3699_v14  ;;  %v3616_v14 = vld [vmem:[#allocation7 + $0x418] sm:$0xf0] }
  0xd1   :  { %1691 = vmatpush.bf16.msra.mxu0 %v3811_v31  ;;  %v3619_v55 = vor.u32 %v4650_v13, %v3616_v14  ;;  %v4106_v31 = vld [vmem:[#allocation10 + $0x1c0] sm:$0xf] }
  0xd2   :  { %1650 = vmatpush.bf16.msrb.mxu1 %v3411_v27  ;;  %v3978_v27 = vld [vmem:[#allocation10 + $0xc0] sm:$0xf]  ;;  %v4107_v40 = vor.u32 %v4775_v32, %v4106_v31  ;;  %v4777_v32 = vld [vmem:[#allocation10 + $0x1e4] sm:$0xf] }
  0xd3   :  { %1663 = vmatpush.bf16.msra.mxu3 %v3555_v24  ;;  %v3995_v24 = vor.u32 %v4747_v17, %v3994_v16  ;;  %v3979_v34 = vor.u32 %v4743_v28, %v3978_v27  ;;  %v3898_v17 = vld [vmem:[#allocation10 + $0x20] sm:$0xf]  ;;  %v4745_v27 = vld [vmem:[#allocation10 + $0xe4] sm:$0xf]  ;;  %v3996_v28 = vld [vmem:[#allocation10 + $0xf0] sm:$0xf0] }
  0xd4   :  { %1677 = vmatpush.bf16.msra.mxu2 %v3683_v25  ;;  %v332_v25 = vperm.slane %v5179_v9, 0 }
  0xd5   :  { %1692 = vmatpush.bf16.msra.mxu0 %v3795_v44  ;;  %v4771_v44 = vld [vmem:[#allocation10 + $0x1ac] sm:$0xf0] }
  0xd6   :  { %1651 = vmatpush.bf16.msrb.mxu1 %v3395_v39  ;;  %v4739_v39 = vld [vmem:[#allocation10 + $0xac] sm:$0xf0] }
  0xd7   :  { %1664 = vmatpush.bf16.msra.mxu3 %v3539_v35  ;;  %v1334_v35 = vadd.f32 %v1333_v53, %v332_v25  ;;  %v4767_v53 = vld [vmem:[#allocation10 + $0x18c] sm:$0xf0] }
  0xd8   :  { %1678 = vmatpush.bf16.msra.mxu2 %v3667_v36  ;;  %v1336_v36 = vadd.f32 %v1335_v30, %v332_v25  ;;  %v3882_v25 = vld [vmem:[#allocation10] sm:$0xf]  ;;  %v4751_v30 = vld [vmem:[#allocation10 + $0x10c] sm:$0xf0] }
  0xd9   :  { %1693 = vmatpush.bf16.msra.mxu0 %v3779_v62  ;;  %v1348_v45 = vadd.f32 %v5177_v61, %v1334_v35  ;;  %v1377_v62 = vpop.f32.mrf.mxu3  ;;  %v1417_v61 = vpop.f32.mrf.mxu2 }
  0xda   :  { %1652 = vmatpush.bf16.msrb.mxu1 %v3379_v56  ;;  %v1350_v46 = vadd.f32 %v1349_v8, %v1336_v36  ;;  %v4124_v8 = vld [vmem:[#allocation10 + $0x1f0] sm:$0xf0]  ;;  %v3999_v36 = vor.u32 %v4745_v27, %v3996_v28  ;;  %v4186_v27 = vld [vmem:[#allocation10 + $0x260] sm:$0xf]  ;;  %v4721_v28 = vld [vmem:[#allocation10 + $0x24] sm:$0xf] }
  0xdb   :  { %1665 = vmatpush.bf16.msra.mxu3 %v3523_v49  ;;  %v4091_v49 = vor.u32 %v4771_v44, %v4090_v43  ;;  %v1362_v57 = vadd.f32 %v5181_v10, %v1348_v45  ;;  %v4759_v10 = vld [vmem:[#allocation10 + $0x14c] sm:$0xf0]  ;;  %v4773_v44 = vld [vmem:[#allocation10 + $0x1c4] sm:$0xf] }
  0xdc   :  { %1679 = vmatpush.bf16.msra.mxu2 %v3651_v51 }
  0xdd   :  { %1694 = vmatpush.bf16.msra.mxu0 %v3763_v15  ;;  %v1389_v51 = vpop.f32.mrf.mxu0  ;;  %v1376_v2 = vadd.f32 %v1375_v33, %v1362_v57 }
  0xde   :  { %1653 = vmatpush.bf16.msrb.mxu1 %v3363_v11  ;;  %v1403_v56 = vpop.f32.mrf.mxu1  ;;  %v4042_v11 = vld [vmem:[#allocation10 + $0x140] sm:$0xf] }
  0xdf   :  { %1666 = vmatpush.bf16.msra.mxu3 %v3507_v5  ;;  %v4727_v5 = vld [vmem:[#allocation10 + $0x4c] sm:$0xf0]  ;;  %v1390_v12 = vadd.f32 %v1389_v51, %v1376_v2  ;;  %v3964_v51 = vld [vmem:[#allocation10 + $0xb0] sm:$0xf0] }
  0xe0   :  { %1680 = vmatpush.bf16.msra.mxu2 %v3635_v6  ;;  %v4059_v6 = vor.u32 %v4763_v0, %v4058_v63  ;;  %v3915_v15 = vor.u32 %v4727_v5, %v3914_v4  ;;  %v4076_v2 = vld [vmem:[#allocation10 + $0x190] sm:$0xf0]  ;;  %v4218_v4 = vld [vmem:[#allocation10 + $0x2a0] sm:$0xf]  ;;  %v4803_v5 = vld [vmem:[#allocation10 + $0x2ac] sm:$0xf0] }
  0xe1   :  { %1654 = vmatmul.bf16.vlgmr.msrb.gmra.mxu1 %v5137_v54  ;;  %1695 = vmatpush.bf16.msra.mxu0 %v3747_v26  ;;  %v3963_v54 = vor.u32 %v4739_v39, %v3962_v38  ;;  %v1404_v22 = vadd.f32 %v1403_v56, %v1390_v12  ;;  %v4719_v26 = vld [vmem:[#allocation10 + $0xc] sm:$0xf0]  ;;  %v4741_v39 = vld [vmem:[#allocation10 + $0xc4] sm:$0xf] }
  0xe2   :  { %1709 = vmatpush.bf16.msra.mxu1 %v3875_v19  ;;  %v4043_v19 = vor.u32 %v4759_v10, %v4042_v11  ;;  %v3883_v33 = vor.u32 %v4719_v26, %v3882_v25  ;;  %v4769_v56 = vld [vmem:[#allocation10 + $0x1a4] sm:$0xf]  ;;  %v4219_v10 = vor.u32 %v4803_v5, %v4218_v4 }
  0xe3   :  { %1667 = vmatpush.bf16.msra.mxu3 %v3491_v23  ;;  %v1419_v23 = vpop.f32.mrf.mxu2  ;;  %v1418_v31 = vadd.f32 %v1417_v61, %v1404_v22  ;;  %v4761_v12 = vld [vmem:[#allocation10 + $0x164] sm:$0xf] }
  0xe4   :  { %1681 = vmatpush.bf16.msra.mxu2 %v3619_v55  ;;  %1696 = vmatmul.bf16.vlgmr.msra.gmra.mxu0 %v5155_v42  ;;  %v4075_v42 = vor.u32 %v4767_v53, %v4074_v52  ;;  %v3899_v55 = vor.u32 %v4723_v18, %v3898_v17  ;;  %v3916_v17 = vld [vmem:[#allocation10 + $0x50] sm:$0xf0]  ;;  %v4757_v22 = vld [vmem:[#allocation10 + $0x144] sm:$0xf] }
  0xe5   :  { %v1391_v7 = vpop.f32.mrf.mxu0  ;;  %v5192_v35 = vpop.f32.mrf.mxu3  ;;  %v1716_v43 = vmax.f32 %v1418_v31, 0.0 }
  0xe6   :  { %2520 = vmatpush.bf16.msrb.mxu1 %v4123_v29  ;;  %1668 = vmatmul.bf16.vlgmr.msra.gmra.mxu3 %v5141_v60  ;;  %v3947_v60 = vor.u32 %v4735_v48, %v3946_v47  ;;  %v1405_v14 = vpop.f32.mrf.mxu1  ;;  %v4010_v29 = vld [vmem:[#allocation10 + $0x100] sm:$0xf]  ;;  %v4811_v48 = vld [vmem:[#allocation10 + $0x2ec] sm:$0xf0] }
  0xe7   :  { %2506 = vmatpush.bf16.msrb.mxu3 %v3995_v24  ;;  %1682 = vmatmul.bf16.vlgmr.msra.gmra.mxu2 %v5153_v37  ;;  %v1364_v37 = vadd.f32 %v1363_v41, %v1350_v46  ;;  %v4011_v38 = vor.u32 %v4751_v30, %v4010_v29  ;;  %v4127_v41 = vor.u32 %v4777_v32, %v4124_v8  ;;  %v4250_v47 = vld [vmem:[#allocation10 + $0x2e0] sm:$0xf]  ;;  %v3900_v29 = vld [vmem:[#allocation10 + $0x30] sm:$0xf0]  ;;  %v4753_v8 = vld [vmem:[#allocation10 + $0x124] sm:$0xf] }
  0xe8   :  { %v4251_v53 = vor.u32 %v4811_v48, %v4250_v47  ;;  %v4748_v48 = vld [vmem:[#allocation10 + $0xf4] sm:$0xf0] }
  0xe9   :  { %v1378_v3 = vadd.f32 %v1377_v62, %v1364_v37  ;;  %v4234_v37 = vld [vmem:[#allocation10 + $0x2c0] sm:$0xf] }
  0xea   :  { %2521 = vmatpush.bf16.msrb.mxu1 %v4107_v40  ;;  %v3980_v40 = vld [vmem:[#allocation10 + $0xd0] sm:$0xf0]  ;;  %2534 = vmatpush.bf16.msrb.mxu2 %v4251_v53  ;;  %v4235_v61 = vor.u32 %v4807_v58, %v4234_v37  ;;  %v4787_v37 = vld [vmem:[#allocation10 + $0x22c] sm:$0xf0] }
  0xeb   :  { %2507 = vmatpush.bf16.msrb.mxu3 %v3979_v34  ;;  %v1392_v13 = vadd.f32 %v1391_v7, %v1378_v3  ;;  %v3983_v46 = vor.u32 %v4741_v39, %v3980_v40  ;;  %v1445_v63 = vpop.f32.mrf.mxu2  ;;  %v3932_v7 = vld [vmem:[#allocation10 + $0x70] sm:$0xf0]  ;;  %v4170_v39 = vld [vmem:[#allocation10 + $0x240] sm:$0xf]  ;;  %v4791_v40 = vld [vmem:[#allocation10 + $0x24c] sm:$0xf0] }
  0xed   :  { %v1406_v16 = vadd.f32 %v1405_v14, %v1392_v13  ;;  %v1433_v0 = vpop.f32.mrf.mxu3  ;;  %v4060_v13 = vld [vmem:[#allocation10 + $0x170] sm:$0xf0] }
  0xee   :  { %2522 = vmatpush.bf16.msrb.mxu1 %v4091_v49  ;;  %v4737_v49 = vld [vmem:[#allocation10 + $0xa4] sm:$0xf]  ;;  %2535 = vmatpush.bf16.msrb.mxu2 %v4235_v61  ;;  %v4063_v18 = vor.u32 %v4761_v12, %v4060_v13  ;;  %v3986_v61 = vld [vmem:[#allocation10 + $0xc8] sm:$0xf]  ;;  %v4740_v13 = vld [vmem:[#allocation10 + $0xb4] sm:$0xf0] }
  0xef   :  { %2508 = vmatpush.bf16.msrb.mxu3 %v3963_v54  ;;  %v1420_v24 = vadd.f32 %v1419_v23, %v1406_v16  ;;  %v4108_v54 = vld [vmem:[#allocation10 + $0x1d0] sm:$0xf0]  ;;  %v3967_v57 = vor.u32 %v4737_v49, %v3964_v51  ;;  %v4725_v16 = vld [vmem:[#allocation10 + $0x44] sm:$0xf]  ;;  %v3970_v12 = vld [vmem:[#allocation10 + $0xa8] sm:$0xf] }
  0xf0   :  { %v4111_v52 = vor.u32 %v4773_v44, %v4108_v54  ;;  %v4044_v23 = vld [vmem:[#allocation10 + $0x150] sm:$0xf0]  ;;  %v3919_v26 = vor.u32 %v4725_v16, %v3916_v17  ;;  %v4002_v44 = vld [vmem:[#allocation10 + $0xe8] sm:$0xf]  ;;  %v4749_v49 = vld [vmem:[#allocation10 + $0x104] sm:$0xf] }
  0xf1   :  { %3879 = vmatmul.msk.bf16.vlgmr.msra.gmra.mxu1 %vm1320_vm0, %v5149_v50  ;;  %v4027_v50 = vor.u32 %v4755_v21, %v4026_v20  ;;  %v1720_v34 = vmax.f32 %v1420_v24, 0.0  ;;  %v333_v24 = vperm.slane %v5179_v9, 1  ;;  %v4047_v30 = vor.u32 %v4757_v22, %v4044_v23  ;;  %v4012_v51 = vld [vmem:[#allocation10 + $0x110] sm:$0xf0] }
  0xf2   :  { %2523 = vmatpush.bf16.msrb.mxu1 %v4075_v42  ;;  %v3948_v42 = vld [vmem:[#allocation10 + $0x90] sm:$0xf0]  ;;  %2536 = vmatpush.bf16.msrb.mxu2 %v4219_v10 }
  0xf3   :  { %2509 = vmatpush.bf16.msrb.mxu3 %v3947_v60  ;;  %v5194_v45 = vpack.c.bf16 %v1720_v34, %v1716_v43  ;;  %v4092_v60 = vld [vmem:[#allocation10 + $0x1b0] sm:$0xf0]  ;;  %v3951_v3 = vor.u32 %v4733_v59, %v3948_v42  ;;  %v1447_v25 = vpop.f32.mrf.mxu2  ;;  %v1432_v34 = vadd.f32 %v5192_v35, %v333_v24  ;;  %v4003_v59 = vor.u32 %v4748_v48, %v4002_v44  ;;  %v3922_v44 = vld [vmem:[#allocation10 + $0x48] sm:$0xf]  ;;  %v4728_v48 = vld [vmem:[#allocation10 + $0x54] sm:$0xf0] }
  0xf4   :  { %v4095_v62 = vor.u32 %v4769_v56, %v4092_v60  ;;  %v3884_v43 = vld [vmem:[#allocation10 + $0x10] sm:$0xf0]  ;;  %v4015_v42 = vor.u32 %v4749_v49, %v4012_v51  ;;  %v4797_v49 = vld [vmem:[#allocation10 + $0x284] sm:$0xf] }
  0xf5   :  { %v4236_v22 = vld [vmem:[#allocation10 + $0x2d0] sm:$0xf0] }
  0xf6   :  { %2524 = vmatpush.bf16.msrb.mxu1 %v4059_v6  ;;  %v4729_v6 = vld [vmem:[#allocation10 + $0x64] sm:$0xf] }
  0xf7   :  { %2510 = vmatpush.bf16.msrb.mxu3 %v3931_v1  ;;  %v4765_v1 = vld [vmem:[#allocation10 + $0x184] sm:$0xf]  ;;  %v3935_v14 = vor.u32 %v4729_v6, %v3932_v7 }
  0xf8   :  { %v4079_v11 = vor.u32 %v4765_v1, %v4076_v2  ;;  %v4809_v7 = vld [vmem:[#allocation10 + $0x2e4] sm:$0xf] }
  0xfa   :  { %2525 = vmatpush.bf16.msrb.mxu1 %v4043_v19  ;;  %v4799_v19 = vld [vmem:[#allocation10 + $0x28c] sm:$0xf0] }
  0xfb   :  { %2511 = vmatpush.bf16.msrb.mxu3 %v3915_v15  ;;  %v4202_v15 = vld [vmem:[#allocation10 + $0x280] sm:$0xf] }
  0xfd   :  { %v1459_v20 = vpop.f32.mrf.mxu0 }
  0xfe   :  { %2526 = vmatpush.bf16.msrb.mxu1 %v4027_v50  ;;  %v4795_v50 = vld [vmem:[#allocation10 + $0x26c] sm:$0xf0]  ;;  %v1473_v32 = vpop.f32.mrf.mxu1 }
  0xff   :  { %2512 = vmatpush.bf16.msrb.mxu3 %v3899_v55  ;;  %v4203_v55 = vor.u32 %v4799_v19, %v4202_v15  ;;  %v4187_v31 = vor.u32 %v4795_v50, %v4186_v27  ;;  %v3954_v19 = vld [vmem:[#allocation10 + $0x88] sm:$0xf] }
 0x101   :  { %2537 = vmatpush.bf16.msrb.mxu2 %v4203_v55  ;;  %v4736_v55 = vld [vmem:[#allocation10 + $0x94] sm:$0xf0] }
 0x102   :  { %2527 = vmatpush.bf16.msrb.mxu1 %v4011_v38  ;;  %v3903_v38 = vor.u32 %v4721_v28, %v3900_v29  ;;  %v3955_v29 = vor.u32 %v4736_v55, %v3954_v19  ;;  %v4827_v19 = vld [vmem:[#allocation10 + $0x36c] sm:$0xf0]  ;;  %v4004_v55 = vld [vmem:[#allocation10 + $0xf8] sm:$0xf0] }
 0x103   :  { %2513 = vmatpush.bf16.msrb.mxu3 %v3883_v33  ;;  %v4028_v33 = vld [vmem:[#allocation10 + $0x130] sm:$0xf0] }
 0x104   :  { %v4031_v54 = vor.u32 %v4753_v8, %v4028_v33  ;;  %v4732_v33 = vld [vmem:[#allocation10 + $0x74] sm:$0xf0] }
 0x105   :  { %v5197_v21 = vpop.f32.mrf.mxu3  ;;  %2538 = vmatpush.bf16.msrb.mxu2 %v4187_v31  ;;  %v1461_v56 = vpop.f32.mrf.mxu0  ;;  %v4801_v31 = vld [vmem:[#allocation10 + $0x2a4] sm:$0xf] }
 0x106   :  { %2576 = vmatpush.bf16.msra.mxu1 %v4127_v41  ;;  %2514 = vmatmul.bf16.vlgmr.msrb.gmra.mxu3 %v5194_v45  ;;  %v4717_v41 = vld [vmem:[#allocation10 + $0x4] sm:$0xf]  ;;  %v1475_v2 = vpop.f32.mrf.mxu1 }
 0x107   :  { %2562 = vmatpush.bf16.msra.mxu3 %v3999_v36  ;;  %v1434_v36 = vadd.f32 %v1433_v0, %v333_v24  ;;  %v3887_v60 = vor.u32 %v4717_v41, %v3884_v43  ;;  %v4744_v0 = vld [vmem:[#allocation10 + $0xd4] sm:$0xf0] }
 0x108   :  { %v3987_v5 = vor.u32 %v4744_v0, %v3986_v61  ;;  %v4780_v41 = vld [vmem:[#allocation10 + $0x1f4] sm:$0xf0]  ;;  %v4188_v61 = vld [vmem:[#allocation10 + $0x270] sm:$0xf0] }
 0x109   :  { %v1448_v53 = vadd.f32 %v1447_v25, %v1434_v36  ;;  %v4378_v25 = vld [vmem:[#allocation10 + $0x3e0] sm:$0xf] }
 0x10a   :  { %2577 = vmatpush.bf16.msra.mxu1 %v4111_v52  ;;  %v1446_v52 = vadd.f32 %v1445_v63, %v1432_v34  ;;  %v1501_v35 = vpop.f32.mrf.mxu2  ;;  %v4138_v63 = vld [vmem:[#allocation10 + $0x200] sm:$0xf] }
 0x10b   :  { %2563 = vmatpush.bf16.msra.mxu3 %v3983_v46  ;;  %v4171_v46 = vor.u32 %v4791_v40, %v4170_v39  ;;  %v1462_v1 = vadd.f32 %v1461_v56, %v1448_v53  ;;  %v4362_v36 = vld [vmem:[#allocation10 + $0x3c0] sm:$0xf]  ;;  %v4130_v40 = vld [vmem:[#allocation10 + $0x1e8] sm:$0xf]  ;;  %v4835_v56 = vld [vmem:[#allocation10 + $0x3ac] sm:$0xf0] }
 0x10c   :  { %v1460_v58 = vadd.f32 %v1459_v20, %v1446_v52  ;;  %v4805_v20 = vld [vmem:[#allocation10 + $0x2c4] sm:$0xf]  ;;  %v4131_v51 = vor.u32 %v4780_v41, %v4130_v40  ;;  %v4204_v52 = vld [vmem:[#allocation10 + $0x290] sm:$0xf0]  ;;  %v4346_v53 = vld [vmem:[#allocation10 + $0x3a0] sm:$0xf] }
 0x10d   :  { %v1489_v47 = vpop.f32.mrf.mxu3  ;;  %2539 = vmatpush.bf16.msrb.mxu2 %v4171_v46  ;;  %v1476_v16 = vadd.f32 %v1475_v2, %v1462_v1  ;;  %v4239_v24 = vor.u32 %v4805_v20, %v4236_v22  ;;  %v4724_v1 = vld [vmem:[#allocation10 + $0x34] sm:$0xf0] }
 0x10e   :  { %2578 = vmatpush.bf16.msra.mxu1 %v4095_v62  ;;  %v1474_v4 = vadd.f32 %v1473_v32, %v1460_v58  ;;  %v4220_v32 = vld [vmem:[#allocation10 + $0x2b0] sm:$0xf0]  ;;  %v4347_v58 = vor.u32 %v4835_v56, %v4346_v53  ;;  %v4768_v22 = vld [vmem:[#allocation10 + $0x194] sm:$0xf0]  ;;  %v334_v53 = vperm.slane %v5179_v9, 2 }
 0x10f   :  { %2564 = vmatpush.bf16.msra.mxu3 %v3967_v57  ;;  %v4154_v57 = vld [vmem:[#allocation10 + $0x220] sm:$0xf]  ;;  %v1490_v17 = vadd.f32 %v1489_v47, %v1476_v16  ;;  %v4223_v34 = vor.u32 %v4801_v31, %v4220_v32  ;;  %v4082_v16 = vld [vmem:[#allocation10 + $0x188] sm:$0xf]  ;;  %v4764_v31 = vld [vmem:[#allocation10 + $0x174] sm:$0xf0] }
 0x110   :  { %v4155_v62 = vor.u32 %v4787_v37, %v4154_v57  ;;  %v1488_v15 = vadd.f32 %v5197_v21, %v1474_v4  ;;  %v4776_v57 = vld [vmem:[#allocation10 + $0x1d4] sm:$0xf0]  ;;  %v4207_v37 = vor.u32 %v4797_v49, %v4204_v52  ;;  %v4098_v4 = vld [vmem:[#allocation10 + $0x1a8] sm:$0xf]  ;;  %v4742_v32 = vld [vmem:[#allocation10 + $0xcc] sm:$0xf] }
 0x111   :  { %v3972_v49 = vld [vmem:[#allocation10 + $0xb8] sm:$0xf0] }
 0x112   :  { %2579 = vmatpush.bf16.msra.mxu1 %v4079_v11  ;;  %2540 = vmatpush.bf16.msrb.mxu2 %v4155_v62  ;;  %v4252_v11 = vld [vmem:[#allocation10 + $0x2f0] sm:$0xf0]  ;;  %v1503_v23 = vpop.f32.mrf.mxu2  ;;  %v1502_v27 = vadd.f32 %v1501_v35, %v1488_v15  ;;  %v4793_v62 = vld [vmem:[#allocation10 + $0x264] sm:$0xf] }
 0x113   :  { %2565 = vmatpush.bf16.msra.mxu3 %v3951_v3  ;;  %v4783_v3 = vld [vmem:[#allocation10 + $0x20c] sm:$0xf0]  ;;  %v1504_v28 = vadd.f32 %v1503_v23, %v1490_v17  ;;  %v4191_v2 = vor.u32 %v4793_v62, %v4188_v61  ;;  %v4746_v23 = vld [vmem:[#allocation10 + $0xec] sm:$0xf]  ;;  %v3956_v61 = vld [vmem:[#allocation10 + $0x98] sm:$0xf0] }
 0x114   :  { %v4139_v6 = vor.u32 %v4783_v3, %v4138_v63  ;;  %v4330_v63 = vld [vmem:[#allocation10 + $0x380] sm:$0xf]  ;;  %v4831_v3 = vld [vmem:[#allocation10 + $0x38c] sm:$0xf0] }
 0x115   :  { %v1515_v10 = vpop.f32.mrf.mxu3  ;;  %v4815_v62 = vld [vmem:[#allocation10 + $0x30c] sm:$0xf0] }
 0x116   :  { %2580 = vmatpush.bf16.msra.mxu1 %v4063_v18  ;;  %2541 = vmatpush.bf16.msrb.mxu2 %v4139_v6  ;;  %v3971_v18 = vor.u32 %v4740_v13, %v3970_v12  ;;  %v1516_v21 = vadd.f32 %v1515_v10, %v1502_v27  ;;  %v4331_v6 = vor.u32 %v4831_v3, %v4330_v63  ;;  %v4720_v12 = vld [vmem:[#allocation10 + $0x14] sm:$0xf0]  ;;  %v4789_v13 = vld [vmem:[#allocation10 + $0x244] sm:$0xf]  ;;  %v4156_v27 = vld [vmem:[#allocation10 + $0x230] sm:$0xf0] }
 0x117   :  { %2566 = vmatpush.bf16.msra.mxu3 %v3935_v14  ;;  %v4255_v14 = vor.u32 %v4809_v7, %v4252_v11  ;;  %v3890_v11 = vld [vmem:[#allocation10 + $0x8] sm:$0xf] }
 0x11a   :  { %2581 = vmatpush.bf16.msra.mxu1 %v4047_v30  ;;  %2590 = vmatpush.bf16.msra.mxu2 %v4255_v14  ;;  %v3938_v30 = vld [vmem:[#allocation10 + $0x68] sm:$0xf]  ;;  %v4172_v14 = vld [vmem:[#allocation10 + $0x250] sm:$0xf0] }
 0x11b   :  { %2567 = vmatpush.bf16.msra.mxu3 %v3919_v26  ;;  %v4843_v26 = vld [vmem:[#allocation10 + $0x3ec] sm:$0xf0]  ;;  %v3939_v47 = vor.u32 %v4732_v33, %v3938_v30  ;;  %v4175_v17 = vor.u32 %v4789_v13, %v4172_v14 }
 0x11c   :  { %v4379_v50 = vor.u32 %v4843_v26, %v4378_v25  ;;  %v3891_v25 = vor.u32 %v4720_v12, %v3890_v11  ;;  %v4785_v26 = vld [vmem:[#allocation10 + $0x224] sm:$0xf]  ;;  %v4823_v30 = vld [vmem:[#allocation10 + $0x34c] sm:$0xf0]  ;;  %v4018_v11 = vld [vmem:[#allocation10 + $0x108] sm:$0xf] }
 0x11d   :  { %v1517_v8 = vpop.f32.mrf.mxu3  ;;  %v5206_v7 = vpop.f32.mrf.mxu0  ;;  %v4159_v33 = vor.u32 %v4785_v26, %v4156_v27  ;;  %v4730_v12 = vld [vmem:[#allocation10 + $0x6c] sm:$0xf] }
 0x11e   :  { %2582 = vmatpush.bf16.msra.mxu1 %v4031_v54  ;;  %2591 = vmatpush.bf16.msra.mxu2 %v4239_v24  ;;  %v1518_v39 = vadd.f32 %v1517_v8, %v1504_v28  ;;  %v1717_v54 = vmax.f32 %v1516_v21, 0.0  ;;  %v1529_v20 = vpop.f32.mrf.mxu1  ;;  %v4007_v28 = vor.u32 %v4746_v23, %v4004_v55  ;;  %v4066_v21 = vld [vmem:[#allocation10 + $0x168] sm:$0xf]  ;;  %v3988_v8 = vld [vmem:[#allocation10 + $0xd8] sm:$0xf0] }
 0x11f   :  { %2568 = vmatpush.bf16.msra.mxu3 %v3903_v38  ;;  %2548 = vmatpush.bf16.msrb.mxu0 %v4379_v50  ;;  %v4839_v38 = vld [vmem:[#allocation10 + $0x3cc] sm:$0xf0]  ;;  %v4083_v50 = vor.u32 %v4768_v22, %v4082_v16  ;;  %v4067_v41 = vor.u32 %v4764_v31, %v4066_v21  ;;  %v1530_v63 = vadd.f32 %v1529_v20, %v334_v53  ;;  %v4837_v16 = vld [vmem:[#allocation10 + $0x3c4] sm:$0xf]  ;;  %v4778_v22 = vld [vmem:[#allocation10 + $0x1ec] sm:$0xf] }
 0x120   :  { %v4363_v43 = vor.u32 %v4839_v38, %v4362_v36  ;;  %v1721_v46 = vmax.f32 %v1518_v39, 0.0  ;;  %v4781_v38 = vld [vmem:[#allocation10 + $0x204] sm:$0xf]  ;;  %v4140_v39 = vld [vmem:[#allocation10 + $0x210] sm:$0xf0] }
 0x121   :  { %v4132_v20 = vld [vmem:[#allocation10 + $0x1f8] sm:$0xf0]  ;;  %v4726_v26 = vld [vmem:[#allocation10 + $0x4c] sm:$0xf]  ;;  %v4348_v21 = vld [vmem:[#allocation10 + $0x3b0] sm:$0xf0] }
 0x122   :  { %2583 = vmatpush.bf16.msra.mxu1 %v4015_v42  ;;  %2592 = vmatpush.bf16.msra.mxu2 %v4223_v34  ;;  %v5203_v35 = vpack.c.bf16 %v1721_v46, %v1717_v54  ;;  %v3906_v42 = vld [vmem:[#allocation10 + $0x28] sm:$0xf]  ;;  %v4282_v54 = vld [vmem:[#allocation10 + $0x320] sm:$0xf]  ;;  %v4819_v46 = vld [vmem:[#allocation10 + $0x32c] sm:$0xf0]  ;;  %v4135_v27 = vor.u32 %v4778_v22, %v4132_v20 }
 0x123   :  { %2569 = vmatpush.bf16.msra.mxu3 %v3887_v60  ;;  %2549 = vmatpush.bf16.msrb.mxu0 %v4363_v43  ;;  %v4114_v60 = vld [vmem:[#allocation10 + $0x1c8] sm:$0xf]  ;;  %v3907_v10 = vor.u32 %v4724_v1, %v3906_v42  ;;  %v3991_v43 = vor.u32 %v4742_v32, %v3988_v8  ;;  %v4283_v52 = vor.u32 %v4819_v46, %v4282_v54  ;;  %v4266_v42 = vld [vmem:[#allocation10 + $0x300] sm:$0xf]  ;;  %v4841_v1 = vld [vmem:[#allocation10 + $0x3e4] sm:$0xf] }
 0x124   :  { %2528 = vmatmul.bf16.vlgmr.msrb.gmra.mxu1 %v5203_v35  ;;  %v4115_v0 = vor.u32 %v4776_v57, %v4114_v60  ;;  %v4034_v60 = vld [vmem:[#allocation10 + $0x128] sm:$0xf]  ;;  %v4756_v57 = vld [vmem:[#allocation10 + $0x134] sm:$0xf0]  ;;  %v4774_v31 = vld [vmem:[#allocation10 + $0x1cc] sm:$0xf] }
 0x125   :  { %v5208_v40 = vpop.f32.mrf.mxu0  ;;  %v4116_v32 = vld [vmem:[#allocation10 + $0x1d8] sm:$0xf0]  ;;  %v4817_v22 = vld [vmem:[#allocation10 + $0x324] sm:$0xf]  ;;  %v4284_v20 = vld [vmem:[#allocation10 + $0x330] sm:$0xf0] }
 0x126   :  { %2570 = vmatmul.bf16.vlgmr.msra.gmra.mxu3 %v5194_v45  ;;  %2632 = vmatpush.bf16.msrb.mxu1 %v4131_v51  ;;  %v4143_v51 = vor.u32 %v4781_v38, %v4140_v39  ;;  %v1531_v56 = vpop.f32.mrf.mxu1  ;;  %v4119_v38 = vor.u32 %v4774_v31, %v4116_v32  ;;  %v3908_v39 = vld [vmem:[#allocation10 + $0x38] sm:$0xf0]  ;;  %v335_v31 = vperm.slane %v5179_v9, 3  ;;  %v4754_v32 = vld [vmem:[#allocation10 + $0x12c] sm:$0xf] }
 0x127   :  { %2618 = vmatpush.bf16.msrb.mxu3 %v4003_v59  ;;  %v3923_v59 = vor.u32 %v4728_v48, %v3922_v44  ;;  %2593 = vmatpush.bf16.msra.mxu2 %v4207_v37  ;;  %v4050_v44 = vld [vmem:[#allocation10 + $0x148] sm:$0xf]  ;;  %v4738_v48 = vld [vmem:[#allocation10 + $0xac] sm:$0xf] }
 0x128   :  { %2550 = vmatpush.bf16.msrb.mxu0 %v4347_v58  ;;  %v3975_v58 = vor.u32 %v4738_v48, %v3972_v49 }
 0x129   :  { %v1543_v36 = vpop.f32.mrf.mxu3 }
 0x12a   :  { %2633 = vmatpush.bf16.msrb.mxu1 %v4115_v0  ;;  %v4267_v0 = vor.u32 %v4815_v62, %v4266_v42  ;;  %v1571_v13 = vpop.f32.mrf.mxu2  ;;  %v4766_v42 = vld [vmem:[#allocation10 + $0x18c] sm:$0xf]  ;;  %v4084_v62 = vld [vmem:[#allocation10 + $0x198] sm:$0xf0] }
 0x12b   :  { %2619 = vmatpush.bf16.msrb.mxu3 %v3987_v5  ;;  %v4772_v5 = vld [vmem:[#allocation10 + $0x1b4] sm:$0xf0]  ;;  %2594 = vmatpush.bf16.msra.mxu2 %v4191_v2  ;;  %v4380_v2 = vld [vmem:[#allocation10 + $0x3f0] sm:$0xf0] }
 0x12c   :  { %v4099_v15 = vor.u32 %v4772_v5, %v4098_v4  ;;  %2551 = vmatpush.bf16.msrb.mxu0 %v4331_v6  ;;  %v4383_v3 = vor.u32 %v4841_v1, %v4380_v2  ;;  %v4035_v5 = vor.u32 %v4756_v57, %v4034_v60  ;;  %v3892_v57 = vld [vmem:[#allocation10 + $0x18] sm:$0xf0] }
 0x12d   :  { %v5213_v4 = vpop.f32.mrf.mxu0 }
 0x12e   :  { %2634 = vmatpush.bf16.msrb.mxu1 %v4099_v15  ;;  %v3940_v15 = vld [vmem:[#allocation10 + $0x78] sm:$0xf0] }
 0x12f   :  { %2620 = vmatpush.bf16.msrb.mxu3 %v3971_v18  ;;  %v4314_v18 = vld [vmem:[#allocation10 + $0x360] sm:$0xf]  ;;  %2595 = vmatpush.bf16.msra.mxu2 %v4175_v17  ;;  %v4364_v17 = vld [vmem:[#allocation10 + $0x3d0] sm:$0xf0] }
 0x130   :  { %v4315_v24 = vor.u32 %v4827_v19, %v4314_v18  ;;  %v1544_v18 = vadd.f32 %v1543_v36, %v1530_v63  ;;  %v1532_v19 = vadd.f32 %v1531_v56, %v334_v53  ;;  %v4367_v23 = vor.u32 %v4837_v16, %v4364_v17  ;;  %v4718_v53 = vld [vmem:[#allocation10 + $0xc] sm:$0xf]  ;;  %v4258_v16 = vld [vmem:[#allocation10 + $0x2e8] sm:$0xf]  ;;  %v4812_v17 = vld [vmem:[#allocation10 + $0x2f4] sm:$0xf0] }
 0x131   :  { %v1545_v14 = vpop.f32.mrf.mxu3  ;;  %v3895_v1 = vor.u32 %v4718_v53, %v3892_v57  ;;  %v4087_v63 = vor.u32 %v4766_v42, %v4084_v62  ;;  %v4796_v53 = vld [vmem:[#allocation10 + $0x274] sm:$0xf0]  ;;  %v4178_v62 = vld [vmem:[#allocation10 + $0x248] sm:$0xf] }
 0x132   :  { %2552 = vmatpush.bf16.msrb.mxu0 %v4315_v24  ;;  %2635 = vmatpush.bf16.msrb.mxu1 %v4083_v50  ;;  %v3924_v50 = vld [vmem:[#allocation10 + $0x58] sm:$0xf0]  ;;  %v1573_v49 = vpop.f32.mrf.mxu2 }
 0x133   :  { %2621 = vmatpush.bf16.msrb.mxu3 %v3955_v29  ;;  %v4298_v29 = vld [vmem:[#allocation10 + $0x340] sm:$0xf]  ;;  %2596 = vmatpush.bf16.msra.mxu2 %v4159_v33  ;;  %v3927_v33 = vor.u32 %v4726_v26, %v3924_v50  ;;  %v4259_v26 = vor.u32 %v4812_v17, %v4258_v16  ;;  %v4242_v50 = vld [vmem:[#allocation10 + $0x2c8] sm:$0xf]  ;;  %v4810_v17 = vld [vmem:[#allocation10 + $0x2ec] sm:$0xf] }
 0x134   :  { %v4299_v34 = vor.u32 %v4823_v30, %v4298_v29  ;;  %2584 = vmatmul.bf16.vlgmr.msra.gmra.mxu1 %v5203_v35  ;;  %v1558_v29 = vadd.f32 %v5206_v7, %v1544_v18  ;;  %v1546_v30 = vadd.f32 %v1545_v14, %v1532_v19  ;;  %v4770_v7 = vld [vmem:[#allocation10 + $0x1ac] sm:$0xf] }
 0x135   :  { %v1615_v46 = vpop.f32.mrf.mxu0 }
 0x136   :  { %2553 = vmatpush.bf16.msrb.mxu0 %v4299_v34  ;;  %2636 = vmatpush.bf16.msrb.mxu1 %v4067_v41  ;;  %v4722_v34 = vld [vmem:[#allocation10 + $0x2c] sm:$0xf]  ;;  %v4829_v41 = vld [vmem:[#allocation10 + $0x384] sm:$0xf]  ;;  %v1560_v54 = vadd.f32 %v5208_v40, %v1546_v30  ;;  %v4268_v30 = vld [vmem:[#allocation10 + $0x310] sm:$0xf0] }
 0x137   :  { %2622 = vmatpush.bf16.msrb.mxu3 %v3939_v47  ;;  %v4760_v47 = vld [vmem:[#allocation10 + $0x154] sm:$0xf0]  ;;  %2597 = vmatpush.bf16.msra.mxu2 %v4143_v51 }
 0x138   :  { %v4051_v37 = vor.u32 %v4760_v47, %v4050_v44  ;;  %v1572_v44 = vadd.f32 %v1571_v13, %v1558_v29  ;;  %v4100_v47 = vld [vmem:[#allocation10 + $0x1b8] sm:$0xf0]  ;;  %v4813_v29 = vld [vmem:[#allocation10 + $0x304] sm:$0xf] }
 0x139   :  { %v4103_v60 = vor.u32 %v4770_v7, %v4100_v47  ;;  %v4210_v7 = vld [vmem:[#allocation10 + $0x288] sm:$0xf]  ;;  %v4800_v47 = vld [vmem:[#allocation10 + $0x294] sm:$0xf0] }
 0x13a   :  { %2554 = vmatpush.bf16.msrb.mxu0 %v4283_v52  ;;  %2637 = vmatpush.bf16.msrb.mxu1 %v4051_v37  ;;  %v3911_v52 = vor.u32 %v4722_v34, %v3908_v39  ;;  %v4825_v37 = vld [vmem:[#allocation10 + $0x364] sm:$0xf] }
 0x13b   :  { %2623 = vmatpush.bf16.msrb.mxu3 %v3923_v59  ;;  %v4734_v59 = vld [vmem:[#allocation10 + $0x8c] sm:$0xf] }
 0x13c   :  { %v3959_v6 = vor.u32 %v4734_v59, %v3956_v61  ;;  %v1574_v59 = vadd.f32 %v1573_v49, %v1560_v54  ;;  %v4020_v54 = vld [vmem:[#allocation10 + $0x118] sm:$0xf0] }
 0x13e   :  { %2555 = vmatpush.bf16.msrb.mxu0 %v4267_v0  ;;  %v1585_v55 = vpop.f32.mrf.mxu1  ;;  %2638 = vmatpush.bf16.msrb.mxu1 %v4035_v5  ;;  %v4300_v5 = vld [vmem:[#allocation10 + $0x350] sm:$0xf0] }
 0x13f   :  { %2624 = vmatpush.bf16.msrb.mxu3 %v3907_v10  ;;  %v4752_v10 = vld [vmem:[#allocation10 + $0x114] sm:$0xf0]  ;;  %v1586_v51 = vadd.f32 %v1585_v55, %v1572_v44  ;;  %v4750_v44 = vld [vmem:[#allocation10 + $0x10c] sm:$0xf] }
 0x140   :  { %v4019_v24 = vor.u32 %v4752_v10, %v4018_v11  ;;  %v4762_v10 = vld [vmem:[#allocation10 + $0x16c] sm:$0xf] }
 0x142   :  { %2604 = vmatpush.bf16.msra.mxu0 %v4383_v3  ;;  %2639 = vmatpush.bf16.msrb.mxu1 %v4019_v24  ;;  %v4821_v3 = vld [vmem:[#allocation10 + $0x344] sm:$0xf]  ;;  %v4758_v24 = vld [vmem:[#allocation10 + $0x14c] sm:$0xf] }
 0x143   :  { %2625 = vmatpush.bf16.msrb.mxu3 %v3891_v25  ;;  %v3943_v25 = vor.u32 %v4730_v12, %v3940_v15  ;;  %v4068_v12 = vld [vmem:[#allocation10 + $0x178] sm:$0xf0]  ;;  %v4303_v13 = vor.u32 %v4821_v3, %v4300_v5  ;;  %v1641_v15 = vpop.f32.mrf.mxu0  ;;  %v4788_v3 = vld [vmem:[#allocation10 + $0x234] sm:$0xf0] }
 0x144   :  { %v4071_v19 = vor.u32 %v4762_v10, %v4068_v12 }
 0x145   :  { %2640 = vmatmul.bf16.vlgmr.msrb.gmra.mxu1 %v5203_v35 }
 0x146   :  { %2626 = vmatmul.bf16.vlgmr.msrb.gmra.mxu3 %v5194_v45  ;;  %2605 = vmatpush.bf16.msra.mxu0 %v4367_v23  ;;  %v1587_v56 = vpop.f32.mrf.mxu1 }
 0x147   :  { %2674 = vmatpush.bf16.msra.mxu3 %v4007_v28  ;;  %v4833_v28 = vld [vmem:[#allocation10 + $0x3a4] sm:$0xf]  ;;  %2688 = vmatpush.bf16.msra.mxu1 %v4135_v27  ;;  %v1588_v0 = vadd.f32 %v1587_v56, %v1574_v59 }
 0x148   :  { %v4351_v8 = vor.u32 %v4833_v28, %v4348_v21  ;;  %v4808_v28 = vld [vmem:[#allocation10 + $0x2d4] sm:$0xf0] }
 0x149   :  { %v1599_v36 = vpop.f32.mrf.mxu3  ;;  %v4243_v34 = vor.u32 %v4808_v28, %v4242_v50  ;;  %v4386_v50 = vld [vmem:[#allocation10 + $0x3e8] sm:$0xf]  ;;  %v4844_v28 = vld [vmem:[#allocation10 + $0x3f4] sm:$0xf0] }
 0x14a   :  { %2606 = vmatpush.bf16.msra.mxu0 %v4351_v8  ;;  %v1600_v40 = vadd.f32 %v1599_v36, %v1586_v51  ;;  %v1627_v18 = vpop.f32.mrf.mxu2  ;;  %v4036_v8 = vld [vmem:[#allocation10 + $0x138] sm:$0xf0]  ;;  %v4804_v36 = vld [vmem:[#allocation10 + $0x2b4] sm:$0xf0]  ;;  %v4211_v51 = vor.u32 %v4800_v47, %v4210_v7  ;;  %v4338_v47 = vld [vmem:[#allocation10 + $0x388] sm:$0xf] }
 0x14b   :  { %2675 = vmatpush.bf16.msra.mxu3 %v3991_v43  ;;  %v4332_v43 = vld [vmem:[#allocation10 + $0x390] sm:$0xf0]  ;;  %2689 = vmatpush.bf16.msra.mxu1 %v4119_v38  ;;  %v4039_v39 = vor.u32 %v4754_v32, %v4036_v8  ;;  %v4802_v32 = vld [vmem:[#allocation10 + $0x2ac] sm:$0xf]  ;;  %v4228_v8 = vld [vmem:[#allocation10 + $0x2b8] sm:$0xf0] }
 0x14c   :  { %v4335_v48 = vor.u32 %v4829_v41, %v4332_v43  ;;  %v1628_v41 = vadd.f32 %v1627_v18, %v335_v31  ;;  %v1643_v43 = vpop.f32.mrf.mxu0  ;;  %v4260_v18 = vld [vmem:[#allocation10 + $0x2f8] sm:$0xf0] }
 0x14d   :  { %v4196_v7 = vld [vmem:[#allocation10 + $0x278] sm:$0xf0] }
 0x14e   :  { %2607 = vmatpush.bf16.msra.mxu0 %v4335_v48  ;;  %v4023_v48 = vor.u32 %v4750_v44, %v4020_v54  ;;  %v1642_v49 = vadd.f32 %v1641_v15, %v1628_v41  ;;  %v4146_v15 = vld [vmem:[#allocation10 + $0x208] sm:$0xf]  ;;  %v4212_v41 = vld [vmem:[#allocation10 + $0x298] sm:$0xf0]  ;;  %v4836_v44 = vld [vmem:[#allocation10 + $0x3b4] sm:$0xf0] }
 0x14f   :  { %2676 = vmatpush.bf16.msra.mxu3 %v3975_v58  ;;  %v4316_v58 = vld [vmem:[#allocation10 + $0x370] sm:$0xf0]  ;;  %2690 = vmatpush.bf16.msra.mxu1 %v4103_v60 }
 0x150   :  { %v4319_v61 = vor.u32 %v4825_v37, %v4316_v58 }
 0x151   :  { %v1601_v2 = vpop.f32.mrf.mxu3 }
 0x152   :  { %v1602_v11 = vadd.f32 %v1601_v2, %v1588_v0  ;;  %2608 = vmatpush.bf16.msra.mxu0 %v4319_v61  ;;  %v4792_v61 = vld [vmem:[#allocation10 + $0x254] sm:$0xf0] }
 0x153   :  { %2677 = vmatpush.bf16.msra.mxu3 %v3959_v6  ;;  %v1614_v6 = vadd.f32 %v5213_v4, %v1600_v40  ;;  %2691 = vmatpush.bf16.msra.mxu1 %v4087_v63  ;;  %v4287_v4 = vor.u32 %v4817_v22, %v4284_v20  ;;  %v4162_v63 = vld [vmem:[#allocation10 + $0x228] sm:$0xf] }
 0x154   :  { %v1616_v14 = vadd.f32 %v1615_v46, %v1602_v11  ;;  %v1629_v46 = vpop.f32.mrf.mxu2  ;;  %v4163_v12 = vor.u32 %v4788_v3, %v4162_v63  ;;  %v4820_v63 = vld [vmem:[#allocation10 + $0x334] sm:$0xf0] }
 0x155   :  { %v1718_v23 = vmax.f32 %v1614_v6, 0.0  ;;  %v1630_v37 = vadd.f32 %v1629_v46, %v335_v31  ;;  %v4387_v31 = vor.u32 %v4844_v28, %v4386_v50  ;;  %v4818_v50 = vld [vmem:[#allocation10 + $0x32c] sm:$0xf]  ;;  %v4292_v28 = vld [vmem:[#allocation10 + $0x338] sm:$0xf0] }
 0x156   :  { %v1722_v55 = vmax.f32 %v1616_v14, 0.0  ;;  %2609 = vmatpush.bf16.msra.mxu0 %v4303_v13 }
 0x157   :  { %2678 = vmatpush.bf16.msra.mxu3 %v3943_v25  ;;  %v4052_v25 = vld [vmem:[#allocation10 + $0x158] sm:$0xf0]  ;;  %2692 = vmatpush.bf16.msra.mxu1 %v4071_v19  ;;  %v1644_v0 = vadd.f32 %v1643_v43, %v1630_v37  ;;  %v4354_v43 = vld [vmem:[#allocation10 + $0x3a8] sm:$0xf] }
 0x158   :  { %v5220_v27 = vpack.c.bf16 %v1722_v55, %v1718_v23  ;;  %v4055_v21 = vor.u32 %v4758_v24, %v4052_v25  ;;  %v4263_v55 = vor.u32 %v4810_v17, %v4260_v18  ;;  %v4806_v25 = vld [vmem:[#allocation10 + $0x2cc] sm:$0xf]  ;;  %v4355_v46 = vor.u32 %v4836_v44, %v4354_v43  ;;  %v4356_v18 = vld [vmem:[#allocation10 + $0x3b8] sm:$0xf0] }
 0x159   :  { %v4834_v17 = vld [vmem:[#allocation10 + $0x3ac] sm:$0xf] }
 0x15a   :  { %2542 = vmatmul.bf16.vlgmr.msrb.gmra.mxu2 %v5220_v27  ;;  %2610 = vmatpush.bf16.msra.mxu0 %v4287_v4  ;;  %v4244_v4 = vld [vmem:[#allocation10 + $0x2d8] sm:$0xf0]  ;;  %v4846_v43 = vld [vmem:[#allocation12 + $0x8] sm:$0xff] }
 0x15b   :  { %2679 = vmatpush.bf16.msra.mxu3 %v3927_v33  ;;  %v4271_v33 = vor.u32 %v4813_v29, %v4268_v30  ;;  %2646 = vmatpush.bf16.msrb.mxu2 %v4259_v26  ;;  %v4247_v30 = vor.u32 %v4806_v25, %v4244_v4  ;;  %v4308_v4 = vld [vmem:[#allocation10 + $0x358] sm:$0xf0]  ;;  %v4858_v44 = vld [vmem:[#allocation12 + $0x68] sm:$0xff] }
 0x15c   :  { %2693 = vmatpush.bf16.msra.mxu1 %v4055_v21 }
 0x15e   :  { %v1655_v38 = vpop.f32.mrf.mxu1  ;;  %2611 = vmatpush.bf16.msra.mxu0 %v4271_v33 }
 0x15f   :  { %2680 = vmatpush.bf16.msra.mxu3 %v3911_v52  ;;  %2647 = vmatpush.bf16.msrb.mxu2 %v4243_v34  ;;  %v4194_v52 = vld [vmem:[#allocation10 + $0x268] sm:$0xf]  ;;  %v1656_v60 = vadd.f32 %v1655_v38, %v1642_v49 }
 0x160   :  { %2694 = vmatpush.bf16.msra.mxu1 %v4039_v39  ;;  %v4195_v59 = vor.u32 %v4796_v53, %v4194_v52  ;;  %v4370_v34 = vld [vmem:[#allocation10 + $0x3c8] sm:$0xf]  ;;  %v4798_v39 = vld [vmem:[#allocation10 + $0x28c] sm:$0xf]  ;;  %v4180_v53 = vld [vmem:[#allocation10 + $0x258] sm:$0xf0] }
 0x161   :  { %v1697_v40 = vpop.f32.mrf.mxu0  ;;  %v4215_v54 = vor.u32 %v4798_v39, %v4212_v41  ;;  %v4790_v52 = vld [vmem:[#allocation10 + $0x24c] sm:$0xf]  ;;  %v4847_v39 = vld [vmem:[#allocation12 + $0x10] sm:$0xff] }
 0x162   :  { %v4859_v41 = vld [vmem:[#allocation12 + $0x70] sm:$0xff] }
 0x163   :  { %2681 = vmatpush.bf16.msra.mxu3 %v3895_v1  ;;  %v4179_v1 = vor.u32 %v4792_v61, %v4178_v62 }
 0x164   :  { %2695 = vmatpush.bf16.msra.mxu1 %v4023_v48  ;;  %v4832_v48 = vld [vmem:[#allocation10 + $0x394] sm:$0xf0] }
 0x166   :  { %2682 = vmatmul.bf16.vlgmr.msra.gmra.mxu3 %v5194_v45  ;;  %v4226_v45 = vld [vmem:[#allocation10 + $0x2a8] sm:$0xf]  ;;  %v1657_v56 = vpop.f32.mrf.mxu1 }
 0x167   :  { %v4227_v9 = vor.u32 %v4804_v36, %v4226_v45  ;;  %2696 = vmatmul.bf16.vlgmr.msra.gmra.mxu1 %v5203_v35  ;;  %v1658_v5 = vadd.f32 %v1657_v56, %v1644_v0  ;;  %v4784_v35 = vld [vmem:[#allocation10 + $0x214] sm:$0xf0]  ;;  %v4231_v36 = vor.u32 %v4802_v32, %v4228_v8  ;;  %v4322_v56 = vld [vmem:[#allocation10 + $0x368] sm:$0xf]  ;;  %v4782_v0 = vld [vmem:[#allocation10 + $0x20c] sm:$0xf] }
 0x168   :  { %v4147_v20 = vor.u32 %v4784_v35, %v4146_v15  ;;  %v4840_v45 = vld [vmem:[#allocation10 + $0x3d4] sm:$0xf0]  ;;  %v4838_v15 = vld [vmem:[#allocation10 + $0x3cc] sm:$0xf]  ;;  %v4372_v35 = vld [vmem:[#allocation10 + $0x3d8] sm:$0xf0] }
 0x169   :  { %2648 = vmatpush.bf16.msrb.mxu2 %v4227_v9  ;;  %v1669_v57 = vpop.f32.mrf.mxu3  ;;  %v1699_v19 = vpop.f32.mrf.mxu0  ;;  %v4371_v38 = vor.u32 %v4840_v45, %v4370_v34  ;;  %v4794_v9 = vld [vmem:[#allocation10 + $0x26c] sm:$0xf]  ;;  %v4852_v32 = vld [vmem:[#allocation12 + $0x38] sm:$0xff]  ;;  %v4851_v8 = vld [vmem:[#allocation12 + $0x30] sm:$0xff] }
 0x16a   :  { %v1683_v58 = vpop.f32.mrf.mxu2  ;;  %v1670_v42 = vadd.f32 %v1669_v57, %v1656_v60  ;;  %2598 = vmatmul.bf16.vlgmr.msra.gmra.mxu2 %v5220_v27  ;;  %v4199_v49 = vor.u32 %v4794_v9, %v4196_v7  ;;  %v4828_v60 = vld [vmem:[#allocation10 + $0x374] sm:$0xf0]  ;;  %v4183_v57 = vor.u32 %v4790_v52, %v4180_v53  ;;  %3002 = vmatpush.bf16.msrb.mxu3 %v4852_v32  ;;  %v4850_v34 = vld [vmem:[#allocation12 + $0x28] sm:$0xff]  ;;  %v4849_v45 = vld [vmem:[#allocation12 + $0x20] sm:$0xff] }
 0x16b   :  { %v4323_v37 = vor.u32 %v4828_v60, %v4322_v56  ;;  %v4868_v9 = vld [vmem:[#allocation12 + $0xb8] sm:$0xff]  ;;  %v4854_v52 = vld [vmem:[#allocation12 + $0x48] sm:$0xff] }
 0x16c   :  { %v1684_v2 = vadd.f32 %v1683_v58, %v1670_v42  ;;  %v4786_v58 = vld [vmem:[#allocation10 + $0x22c] sm:$0xf]  ;;  %v4824_v42 = vld [vmem:[#allocation10 + $0x354] sm:$0xf0] }
 0x16d   :  { %2649 = vmatpush.bf16.msrb.mxu2 %v4211_v51  ;;  %v4339_v51 = vor.u32 %v4832_v48, %v4338_v47  ;;  %v4866_v53 = vld [vmem:[#allocation12 + $0xa8] sm:$0xff] }
 0x16e   :  { %v1711_v6 = vpop.f32.mrf.mxu1  ;;  %v1698_v13 = vadd.f32 %v1697_v40, %v1684_v2  ;;  %v4306_v40 = vld [vmem:[#allocation10 + $0x348] sm:$0xf]  ;;  %3003 = vmatpush.bf16.msrb.mxu3 %v4851_v8  ;;  %v5237_v56 = vld [vmem:[%s5276_s5] sm:$0xf]  ;;  %s3060_s5 = sld [smem:[#allocation3]] }
 0x16f   :  { %v4307_v61 = vor.u32 %v4824_v42, %v4306_v40  ;;  %v4290_v2 = vld [vmem:[#allocation10 + $0x328] sm:$0xf]  ;;  %v1858_v40 = vperm.slane %v5237_v56, 0  ;;  %v4864_v42 = vld [vmem:[#allocation12 + $0x98] sm:$0xff] }
 0x170   :  { %v1712_v23 = vadd.f32 %v1711_v6, %v1698_v13  ;;  %v4274_v6 = vld [vmem:[#allocation10 + $0x308] sm:$0xf] }
 0x171   :  { %2650 = vmatpush.bf16.msrb.mxu2 %v4195_v59  ;;  %v1671_v11 = vpop.f32.mrf.mxu3  ;;  %v4164_v59 = vld [vmem:[#allocation10 + $0x238] sm:$0xf0] }
 0x172   :  { %v1672_v10 = vadd.f32 %v1671_v11, %v1658_v5  ;;  %v1685_v14 = vpop.f32.mrf.mxu2  ;;  %v1719_v21 = vmax.f32 %v1712_v23, 0.0  ;;  %v4167_v62 = vor.u32 %v4786_v58, %v4164_v59  ;;  %v4291_v5 = vor.u32 %v4820_v63, %v4290_v2  ;;  %v4816_v11 = vld [vmem:[#allocation10 + $0x314] sm:$0xf0]  ;;  %3004 = vmatpush.bf16.msrb.mxu3 %v4850_v34  ;;  %v4863_v2 = vld [vmem:[#allocation12 + $0x90] sm:$0xff] }
 0x173   :  { %v4275_v13 = vor.u32 %v4816_v11, %v4274_v6 }
 0x174   :  { %v1686_v16 = vadd.f32 %v1685_v14, %v1672_v10  ;;  %v4842_v10 = vld [vmem:[#allocation10 + $0x3ec] sm:$0xf] }
 0x175   :  { %2651 = vmatpush.bf16.msrb.mxu2 %v4179_v1  ;;  %v4148_v1 = vld [vmem:[#allocation10 + $0x218] sm:$0xf0] }
 0x176   :  { %v1700_v22 = vadd.f32 %v1699_v19, %v1686_v16  ;;  %v1713_v24 = vpop.f32.mrf.mxu1  ;;  %v4151_v3 = vor.u32 %v4782_v0, %v4148_v1  ;;  %v4375_v16 = vor.u32 %v4838_v15, %v4372_v35  ;;  %v4359_v19 = vor.u32 %v4834_v17, %v4356_v18  ;;  %3005 = vmatpush.bf16.msrb.mxu3 %v4849_v45  ;;  %v4861_v17 = vld [vmem:[#allocation12 + $0x80] sm:$0xff]  ;;  %v4876_v18 = vld [vmem:[#allocation12 + $0xf8] sm:$0xff] }
 0x178   :  { %v1714_v26 = vadd.f32 %v1713_v24, %v1700_v22  ;;  %v4830_v22 = vld [vmem:[#allocation10 + $0x38c] sm:$0xf]  ;;  %v4324_v24 = vld [vmem:[#allocation10 + $0x378] sm:$0xf0] }
 0x179   :  { %2652 = vmatpush.bf16.msrb.mxu2 %v4163_v12  ;;  %v4388_v12 = vld [vmem:[#allocation10 + $0x3f8] sm:$0xf0] }
 0x17a   :  { %v1723_v29 = vmax.f32 %v1714_v26, 0.0  ;;  %v4391_v14 = vor.u32 %v4842_v10, %v4388_v12 }
 0x17c   :  { %v5226_v33 = vpack.c.bf16 %v1723_v29, %v1719_v21  ;;  %v4295_v21 = vor.u32 %v4818_v50, %v4292_v28  ;;  %v4814_v29 = vld [vmem:[#allocation10 + $0x30c] sm:$0xf] }
 0x17d   :  { %2653 = vmatpush.bf16.msrb.mxu2 %v4147_v20  ;;  %v4340_v20 = vld [vmem:[#allocation10 + $0x398] sm:$0xf0] }
 0x17e   :  { %2556 = vmatmul.bf16.vlgmr.msrb.gmra.mxu0 %v5226_v33  ;;  %v4343_v23 = vor.u32 %v4830_v22, %v4340_v20 }
 0x17f   :  { %2660 = vmatpush.bf16.msrb.mxu0 %v4387_v31 }
 0x180   :  { %2654 = vmatmul.bf16.vlgmr.msrb.gmra.mxu2 %v5220_v27 }
 0x181   :  { %2702 = vmatpush.bf16.msra.mxu2 %v4263_v55  ;;  %v4826_v55 = vld [vmem:[#allocation10 + $0x36c] sm:$0xf] }
 0x182   :  { %v4327_v25 = vor.u32 %v4826_v55, %v4324_v24  ;;  %v4875_v55 = vld [vmem:[#allocation12 + $0xf0] sm:$0xff] }
 0x183   :  { %2661 = vmatpush.bf16.msrb.mxu0 %v4371_v38  ;;  %v4860_v38 = vld [vmem:[#allocation12 + $0x78] sm:$0xff] }
 0x184   :  { %3016 = vmatpush.bf16.msrb.mxu1 %v4860_v38 }
 0x185   :  { %2703 = vmatpush.bf16.msra.mxu2 %v4247_v30  ;;  %v4276_v30 = vld [vmem:[#allocation10 + $0x318] sm:$0xf0] }
 0x186   :  { %v4279_v31 = vor.u32 %v4814_v29, %v4276_v30  ;;  %v4873_v29 = vld [vmem:[#allocation12 + $0xe0] sm:$0xff] }
 0x187   :  { %2662 = vmatpush.bf16.msrb.mxu0 %v4355_v46  ;;  %v4856_v46 = vld [vmem:[#allocation12 + $0x58] sm:$0xff] }
 0x188   :  { %3017 = vmatpush.bf16.msrb.mxu1 %v4859_v41  ;;  %v4872_v41 = vld [vmem:[#allocation12 + $0xd8] sm:$0xff] }
 0x189   :  { %2704 = vmatpush.bf16.msra.mxu2 %v4231_v36  ;;  %v4848_v36 = vld [vmem:[#allocation12 + $0x18] sm:$0xff]  ;;  %v2515_v47 = vpop.f32.mrf.mxu3 }
 0x18a   :  { %3006 = vmatpush.bf16.msrb.mxu3 %v4848_v36 }
 0x18b   :  { %2663 = vmatpush.bf16.msrb.mxu0 %v4339_v51  ;;  %v4867_v51 = vld [vmem:[#allocation12 + $0xb0] sm:$0xff] }
 0x18c   :  { %3018 = vmatpush.bf16.msrb.mxu1 %v4858_v44 }
 0x18d   :  { %2705 = vmatpush.bf16.msra.mxu2 %v4215_v54  ;;  %v4857_v54 = vld [vmem:[#allocation12 + $0x60] sm:$0xff] }
 0x18e   :  { %2612 = vmatmul.bf16.vlgmr.msra.gmra.mxu0 %v5226_v33  ;;  %3007 = vmatpush.bf16.msrb.mxu3 %v4847_v39 }
 0x18f   :  { %2664 = vmatpush.bf16.msrb.mxu0 %v4323_v37  ;;  %v4865_v37 = vld [vmem:[#allocation12 + $0xa0] sm:$0xff] }
 0x190   :  { %3019 = vmatpush.bf16.msrb.mxu1 %v4857_v54 }
 0x191   :  { %2706 = vmatpush.bf16.msra.mxu2 %v4199_v49  ;;  %v4855_v49 = vld [vmem:[#allocation12 + $0x50] sm:$0xff]  ;;  %v2517_v58 = vpop.f32.mrf.mxu3 }
 0x192   :  { %3008 = vmatpush.bf16.msrb.mxu3 %v4846_v43  ;;  %v2518_v0 = vadd.f32 %v2517_v58, %v1858_v40  ;;  %v1860_v43 = vperm.slane %v5237_v56, 2 }
 0x193   :  { %2665 = vmatpush.bf16.msrb.mxu0 %v4307_v61  ;;  %v2516_v61 = vadd.f32 %v2515_v47, %v1858_v40 }
 0x194   :  { %3020 = vmatpush.bf16.msrb.mxu1 %v4856_v46 }
 0x195   :  { %2707 = vmatpush.bf16.msra.mxu2 %v4183_v57  ;;  %v4853_v57 = vld [vmem:[#allocation12 + $0x40] sm:$0xff] }
 0x197   :  { %2666 = vmatpush.bf16.msrb.mxu0 %v4291_v5 }
 0x198   :  { %3021 = vmatpush.bf16.msrb.mxu1 %v4855_v49  ;;  %v4870_v49 = vld [vmem:[#allocation12 + $0xc8] sm:$0xff] }
 0x199   :  { %2708 = vmatpush.bf16.msra.mxu2 %v4167_v62 }
 0x19b   :  { %2667 = vmatpush.bf16.msrb.mxu0 %v4275_v13  ;;  %v4862_v13 = vld [vmem:[#allocation12 + $0x88] sm:$0xff] }
 0x19c   :  { %3022 = vmatpush.bf16.msrb.mxu1 %v4854_v52 }
 0x19d   :  { %2709 = vmatpush.bf16.msra.mxu2 %v4151_v3 }
 0x19e   :  { %2668 = vmatmul.bf16.vlgmr.msrb.gmra.mxu0 %v5226_v33 }
 0x19f   :  { %2716 = vmatpush.bf16.msra.mxu0 %v4391_v14 }
 0x1a0   :  { %2710 = vmatmul.bf16.vlgmr.msra.gmra.mxu2 %v5220_v27  ;;  %v4822_v27 = vld [vmem:[#allocation10 + $0x34c] sm:$0xf]  ;;  %3023 = vmatpush.bf16.msrb.mxu1 %v4853_v57 }
 0x1a1   :  { %v4311_v26 = vor.u32 %v4822_v27, %v4308_v4  ;;  %v2529_v7 = vpop.f32.mrf.mxu1  ;;  %3030 = vmatpush.bf16.msrb.mxu2 %v4868_v9  ;;  %v4874_v4 = vld [vmem:[#allocation12 + $0xe8] sm:$0xff] }
 0x1a2   :  { %v2530_v1 = vadd.f32 %v2529_v7, %v2516_v61 }
 0x1a3   :  { %2717 = vmatpush.bf16.msra.mxu0 %v4375_v16 }
 0x1a5   :  { %3031 = vmatpush.bf16.msrb.mxu2 %v4867_v51 }
 0x1a7   :  { %2718 = vmatpush.bf16.msra.mxu0 %v4359_v19  ;;  %v1859_v19 = vperm.slane %v5237_v56, 1 }
 0x1a9   :  { %3032 = vmatpush.bf16.msrb.mxu2 %v4866_v53  ;;  %v2531_v60 = vpop.f32.mrf.mxu1  ;;  %v2571_v63 = vpop.f32.mrf.mxu3 }
 0x1aa   :  { %v2532_v5 = vadd.f32 %v2531_v60, %v2518_v0  ;;  %v2572_v27 = vadd.f32 %v2571_v63, %v1859_v19 }
 0x1ab   :  { %2719 = vmatpush.bf16.msra.mxu0 %v4343_v23 }
 0x1ad   :  { %3033 = vmatpush.bf16.msrb.mxu2 %v4865_v37  ;;  %v4869_v37 = vld [vmem:[#allocation12 + $0xc0] sm:$0xff] }
 0x1af   :  { %2720 = vmatpush.bf16.msra.mxu0 %v4327_v25 }
 0x1b1   :  { %3034 = vmatpush.bf16.msrb.mxu2 %v4864_v42  ;;  %v2585_v3 = vpop.f32.mrf.mxu1  ;;  %v2573_v20 = vpop.f32.mrf.mxu3 }
 0x1b2   :  { %v2586_v50 = vadd.f32 %v2585_v3, %v2572_v27  ;;  %v3061_v27 = vstv %s3060_s5 }
 0x1b3   :  { %2721 = vmatpush.bf16.msra.mxu0 %v4311_v26  ;;  %v2574_v26 = vadd.f32 %v2573_v20, %v1859_v19 }
 0x1b5   :  { %3035 = vmatpush.bf16.msrb.mxu2 %v4863_v2  ;;  %v1861_v2 = vperm.slane %v5237_v56, 3  ;;  %v3058_v56 = vlaneseq }
 0x1b7   :  { %2722 = vmatpush.bf16.msra.mxu0 %v4295_v21 }
 0x1b9   :  { %3036 = vmatpush.bf16.msrb.mxu2 %v4862_v13  ;;  %v2587_v23 = vpop.f32.mrf.mxu1 }
 0x1ba   :  { %v2588_v28 = vadd.f32 %v2587_v23, %v2574_v26  ;;  %v4892_v23 = vld [vmem:[%s5278_s7] ss:$0 sm:$0xff]  ;;  %s5071_s7 = smov [#allocation13]  }
 0x1bb   :  { %2723 = vmatpush.bf16.msra.mxu0 %v4279_v31  ;;  %s3075_s16 = sshll.u32 %s5071_s7, 4  ;;  %s3076_s16 = int_to_ptr.vmem [resolvable:$true] %s3075_s16 }
 0x1bd   :  { %3037 = vmatpush.bf16.msrb.mxu2 %v4861_v17 }
 0x1be   :  { %2724 = vmatmul.bf16.vlgmr.msra.gmra.mxu0 %v5226_v33  ;;  %v4845_v33 = vld [vmem:[#allocation12] sm:$0xff] }
 0x1bf   :  { %3009 = vmatpush.bf16.msrb.mxu3 %v4845_v33  ;;  %3044 = vmatpush.bf16.msrb.mxu0 %v4876_v18  ;;  %v4871_v33 = vld [vmem:[#allocation12 + $0xd0] sm:$0xff] }
 0x1c2   :  { %v2641_v8 = vpop.f32.mrf.mxu1 }
 0x1c3   :  { %3045 = vmatpush.bf16.msrb.mxu0 %v4875_v55 }
 0x1c7   :  { %3046 = vmatpush.bf16.msrb.mxu0 %v4874_v4  ;;  %v3064_v4 = vstv %s4520_s14 }
 0x1c9   :  { %v2627_v30 = vpop.f32.mrf.mxu3 }
 0x1ca   :  { %v2628_v9 = vadd.f32 %v2627_v30, %v1860_v43  ;;  %v2643_v7 = vpop.f32.mrf.mxu1 }
 0x1cb   :  { %3047 = vmatpush.bf16.msrb.mxu0 %v4873_v29 }
 0x1cf   :  { %3048 = vmatpush.bf16.msrb.mxu0 %v4872_v41 }
 0x1d1   :  { %v2629_v54 = vpop.f32.mrf.mxu3 }
 0x1d2   :  { %v2630_v47 = vadd.f32 %v2629_v54, %v1860_v43 }
 0x1d3   :  { %3049 = vmatpush.bf16.msrb.mxu0 %v4871_v33 }
 0x1d4   :  { %v2644_v52 = vadd.f32 %v2643_v7, %v2630_v47 }
 0x1d7   :  { %3050 = vmatpush.bf16.msrb.mxu0 %v4870_v49 }
 0x1db   :  { %3051 = vmatpush.bf16.msrb.mxu0 %v4869_v37 }
 0x1dd   :  { %v2543_v48 = vpop.f32.mrf.mxu2 }
 0x1de   :  { %v2544_v6 = vadd.f32 %v2543_v48, %v2530_v1  ;;  %v2642_v48 = vadd.f32 %v2641_v8, %v2628_v9 }
 0x1e4   :  { %v2697_v0 = vpop.f32.mrf.mxu1 }
 0x1e5   :  { %v2545_v59 = vpop.f32.mrf.mxu2 }
 0x1e6   :  { %v2546_v10 = vadd.f32 %v2545_v59, %v2532_v5 }
 0x1e9   :  { %v2683_v61 = vpop.f32.mrf.mxu3 }
 0x1ea   :  { %v2684_v5 = vadd.f32 %v2683_v61, %v1861_v2 }
 0x1ed   :  { %v2599_v11 = vpop.f32.mrf.mxu2 }
 0x1ee   :  { %v2600_v21 = vadd.f32 %v2599_v11, %v2586_v50 }
 0x1f1   :  { %v2685_v63 = vpop.f32.mrf.mxu3 }
 0x1f2   :  { %v2686_v11 = vadd.f32 %v2685_v63, %v1861_v2 }
 0x1f5   :  { %v2601_v24 = vpop.f32.mrf.mxu2 }
 0x1f6   :  { %v2602_v31 = vadd.f32 %v2601_v24, %v2588_v28  ;;  %v3059_v24 = vand.u32 127, %v3058_v56 }
 0x1f8   :  { %vm5246_vm1 = vcmp.lt.s32.totalorder %v3059_v24, %v3061_v27  ;;  %vm5250_vm2 = vcmp.ge.s32.totalorder %v3059_v24, %v3064_v4 }
 0x1f9   :  { %vm3066_vm3 = vmor %vm5246_vm1, %vm5250_vm2 }
 0x1fb   :  { %v2557_v62 = vpop.f32.mrf.mxu0 }
 0x1fc   :  { %v2558_v12 = vadd.f32 %v2557_v62, %v2544_v6  ;;  %v2699_v6 = vpop.f32.mrf.mxu1 }
 0x1fd   :  { %v2700_v13 = vadd.f32 %v2699_v6, %v2686_v11 }
 0x1fe   :  { %v2730_v35 = vmax.f32 %v2558_v12, 0.0 }
 0x203   :  { %v2559_v14 = vpop.f32.mrf.mxu0  ;;  %v2655_v36 = vpop.f32.mrf.mxu2 }
 0x204   :  { %v2560_v15 = vadd.f32 %v2559_v14, %v2546_v10  ;;  %v2656_v53 = vadd.f32 %v2655_v36, %v2642_v48  ;;  %v2698_v10 = vadd.f32 %v2697_v0, %v2684_v5 }
 0x206   :  { %v2734_v16 = vmax.f32 %v2560_v15, 0.0 }
 0x208   :  { %v2738_v22 = vpack.c.bf16 %v2734_v16, %v2730_v35 }
 0x20a   :  { %3010 = vmatmul.bf16.vlgmr.msrb.gmra.mxu3 %v2738_v22 }
 0x20b   :  { %v2613_v25 = vpop.f32.mrf.mxu0  ;;  %v2657_v51 = vpop.f32.mrf.mxu2 }
 0x20c   :  { %v2614_v32 = vadd.f32 %v2613_v25, %v2600_v21  ;;  %v2658_v60 = vadd.f32 %v2657_v51, %v2644_v52 }
 0x20e   :  { %v2731_v38 = vmax.f32 %v2614_v32, 0.0 }
 0x213   :  { %v2615_v34 = vpop.f32.mrf.mxu0 }
 0x214   :  { %v2616_v45 = vadd.f32 %v2615_v34, %v2602_v31 }
 0x216   :  { %v2735_v39 = vmax.f32 %v2616_v45, 0.0 }
 0x218   :  { %v2739_v44 = vpack.c.bf16 %v2735_v39, %v2731_v38 }
 0x21a   :  { %3024 = vmatmul.bf16.vlgmr.msrb.gmra.mxu1 %v2739_v44 }
 0x21b   :  { %v2669_v46 = vpop.f32.mrf.mxu0 }
 0x21c   :  { %v2670_v57 = vadd.f32 %v2669_v46, %v2656_v53 }
 0x21e   :  { %v2732_v40 = vmax.f32 %v2670_v57, 0.0 }
 0x223   :  { %v2671_v58 = vpop.f32.mrf.mxu0  ;;  %v2711_v1 = vpop.f32.mrf.mxu2 }
 0x224   :  { %v2672_v59 = vadd.f32 %v2671_v58, %v2658_v60  ;;  %v2712_v14 = vadd.f32 %v2711_v1, %v2698_v10 }
 0x226   :  { %v2736_v42 = vmax.f32 %v2672_v59, 0.0 }
 0x228   :  { %v2740_v62 = vpack.c.bf16 %v2736_v42, %v2732_v40 }
 0x22a   :  { %3038 = vmatmul.bf16.vlgmr.msrb.gmra.mxu2 %v2740_v62 }
 0x22b   :  { %v2713_v12 = vpop.f32.mrf.mxu2 }
 0x22c   :  { %v2714_v15 = vadd.f32 %v2713_v12, %v2700_v13 }
 0x23b   :  { %v2725_v3 = vpop.f32.mrf.mxu0 }
 0x23c   :  { %v2726_v35 = vadd.f32 %v2725_v3, %v2712_v14 }
 0x23e   :  { %v2733_v18 = vmax.f32 %v2726_v35, 0.0 }
 0x243   :  { %v2727_v16 = vpop.f32.mrf.mxu0 }
 0x244   :  { %v2728_v17 = vadd.f32 %v2727_v16, %v2714_v15 }
 0x246   :  { %v2737_v19 = vmax.f32 %v2728_v17, 0.0 }
 0x248   :  { %v2741_v22 = vpack.c.bf16 %v2737_v19, %v2733_v18 }
 0x24a   :  { %3052 = vmatmul.bf16.vlgmr.msrb.gmra.mxu0 %v2741_v22 }
 0x28d   :  { %v3011_v20 = vpop.f32.mrf.mxu3 }
 0x28e   :  { %v3012_v26 = vadd.f32 %v4892_v23, %v3011_v20 }
 0x295   :  { %v3013_v30 = vpop.f32.mrf.mxu3 }
 0x296   :  { %v3014_v34 = vadd.f32 %v4892_v23, %v3013_v30 }
 0x297   :  { %v3025_v55 = vpop.f32.mrf.mxu1 }
 0x298   :  { %v3026_v50 = vadd.f32 %v3025_v55, %v3012_v26 }
 0x29f   :  { %v3027_v8 = vpop.f32.mrf.mxu1 }
 0x2a0   :  { %v3028_v38 = vadd.f32 %v3027_v8, %v3014_v34 }
 0x2ad   :  { %v3039_v25 = vpop.f32.mrf.mxu2 }
 0x2ae   :  { %v3040_v29 = vadd.f32 %v3039_v25, %v3026_v50 }
 0x2b5   :  { %v3041_v36 = vpop.f32.mrf.mxu2 }
 0x2b6   :  { %v3042_v39 = vadd.f32 %v3041_v36, %v3028_v38 }
 0x2c7   :  { %v3053_v31 = vpop.f32.mrf.mxu0 }
 0x2c8   :  { %v3054_v32 = vadd.f32 %v3053_v31, %v3040_v29 }
 0x2ca   :  { %v3067_v45 = vsel %vm3066_vm3, -1e+11, %v3054_v32 }
 0x2cb   :  { %3069 = vst [vmem:[#allocation13] sm:$0xff] %v3067_v45 }
 0x2cf   :  { %v3055_v41 = vpop.f32.mrf.mxu0 }
 0x2d0   :  { %v3056_v43 = vadd.f32 %v3055_v41, %v3042_v39 }
 0x2d2   :  { %v3068_v44 = vsel %vm3066_vm3, -1e+11, %v3056_v43 }
 0x2d3   :  { %3070 = vst [vmem:[#allocation13 + $0x8] sm:$0xff] %v3068_v44 }
 0x2d4   :  { %3083 = dma.vmem_to_hbm [thread:$0]  %s3076_s16, 256, %s3078_s19, [#allocation6], %s5072_s20, %s5072_s20, %s5073_s21  }
 0x2d5   :  { %5057 = dma.done.wait [#allocation6], 256  }
 0x2d6   :  { %5058 = vsyncadd [#allocation6], 4294967040 }
 0x2d7   :  { %3088 = vsyncpa [#allocation5], 1 }
 0x2d8   :  { %3089 = vsyncpa [#allocation8], 1 }
 0x2d9   :  { %3090 = vsyncpa [#allocation11], 1 }
 0x2da   :  { %3091 = vsyncpa [#allocation6], 1 }

</bundles_post_ra>
